<compile_context>
chip_gen: v6e
topology: v6e:2x2x1
jax: 0.10.0
libtpu: 0.0.40
codegen_flags: <defaults>
</compile_context>

<pallas_src>
import functools

import jax
import jax.numpy as jnp
from jax import lax
from jax.experimental import pallas as pl
from jax.experimental.pallas import tpu as pltpu

LANE = 128
NEG_LARGE = -1e30  # mask value for padded logit lanes (avoids -inf arithmetic)


def _round_up(x, m):
    return (x + m - 1) // m * m


# ----------------------------------------------------------------------------
# Kernel: one batch tile, full T-step recurrence per invocation.
# ----------------------------------------------------------------------------
def rnn_seq_kernel(x_ref, wx_ref, wh_ref, b_ref, h0_ref,
                   out_ref, hfin_ref, xw_ref,
                   *, seq_len, h_pad, output_size):
    bm = h0_ref.shape[0]
    in_pad = x_ref.shape[-1]
    n_pad = wx_ref.shape[-1]
    out_pad = n_pad - h_pad

    # ---- Stage 1 (off the serial chain): project ALL timesteps at once ----
    # (T*bm, in_pad) @ (in_pad, n_pad) fills the MXU rows far better than T
    # separate M=bm matmuls, and the bias is added once here, not per step.
    x_all = x_ref[...].reshape(seq_len * bm, in_pad)
    xw_ref[...] = (jnp.dot(x_all.astype(wx_ref.dtype), wx_ref[...],
                           preferred_element_type=jnp.float32)
                   + b_ref[...])

    wh = wh_ref[...]                                           # VMEM-resident weights
    lane_idx = lax.broadcasted_iota(jnp.int32, (bm, out_pad), 1)  # hoisted (no CSE)

    # ---- Stage 2: serial recurrence, hidden carried as a loop value ----
    def step(t, h):
        off = pl.multiple_of(t * bm, bm)
        pre = (jnp.dot(h.astype(wh.dtype), wh, preferred_element_type=jnp.float32)
               + xw_ref[pl.ds(off, bm), :])                   # (bm, n_pad)
        h_new = pre[:, :h_pad]                                 # lane-aligned slice
        logits = jnp.where(lane_idx < output_size, pre[:, h_pad:],
                           jnp.float32(NEG_LARGE))
        m = jnp.max(logits, axis=1, keepdims=True)
        shifted = logits - m
        lse = jnp.log(jnp.sum(jnp.exp(shifted), axis=1, keepdims=True))
        out_ref[t] = (shifted - lse).astype(out_ref.dtype)     # lane-dense store
        return h_new

    h_final = lax.fori_loop(0, seq_len, step, h0_ref[...],
                            unroll=seq_len <= 16)
    hfin_ref[...] = h_final.astype(hfin_ref.dtype)


# ----------------------------------------------------------------------------
# One-time parameter preparation (hoisted out of the per-step path).
# ----------------------------------------------------------------------------
def prepare_params(params, input_size, hidden_size, output_size,
                   mxu_dtype=jnp.float32):
    """Transpose, split the concat, fuse i2h/i2o along N, pad to lane multiples.

    Set mxu_dtype=jnp.bfloat16 on v6e/v7x for native MXU throughput; the hidden
    carry and all accumulation stay f32 inside the kernel.
    """
    w_i2h, b_i2h = params["w_i2h"], params["b_i2h"]   # (H, I+H), (H,)
    w_i2o, b_i2o = params["w_i2o"], params["b_i2o"]   # (O, I+H), (O,)

    in_pad = _round_up(input_size, LANE)
    h_pad = _round_up(hidden_size, LANE)
    out_pad = _round_up(output_size, LANE)
    n_pad = h_pad + out_pad

    wxh = jnp.transpose(w_i2h[:, :input_size])        # (I, H)
    whh = jnp.transpose(w_i2h[:, input_size:])        # (H, H)
    wxo = jnp.transpose(w_i2o[:, :input_size])        # (I, O)
    who = jnp.transpose(w_i2o[:, input_size:])        # (H, O)

    wx = jnp.zeros((in_pad, n_pad), jnp.float32)
    wx = wx.at[:input_size, :hidden_size].set(wxh)
    wx = wx.at[:input_size, h_pad:h_pad + output_size].set(wxo)

    wh = jnp.zeros((h_pad, n_pad), jnp.float32)
    wh = wh.at[:hidden_size, :hidden_size].set(whh)
    wh = wh.at[:hidden_size, h_pad:h_pad + output_size].set(who)

    b = jnp.zeros((1, n_pad), jnp.float32)
    b = b.at[0, :hidden_size].set(b_i2h)
    b = b.at[0, h_pad:h_pad + output_size].set(b_i2o)

    return {"wx": wx.astype(mxu_dtype), "wh": wh.astype(mxu_dtype), "b": b,
            "input_size": input_size, "hidden_size": hidden_size,
            "output_size": output_size, "h_pad": h_pad}


# ----------------------------------------------------------------------------
# Fused sequence forward: all T steps in one pallas_call, grid over batch only.
# ----------------------------------------------------------------------------
def rnn_sequence_forward(x_seq, h0, prep, *, block_b=8):
    """x_seq: (T, B, input_size) one-hot; h0: (B, hidden). Returns (out_seq, h_final)."""
    T, B, input_size = x_seq.shape
    hidden_size = prep["hidden_size"]
    output_size = prep["output_size"]
    h_pad = prep["h_pad"]
    in_pad, n_pad = prep["wx"].shape
    out_pad = n_pad - h_pad

    # Pad batch to a block multiple and features to lane multiples (zeros inert).
    Bp = _round_up(max(B, block_b), block_b)
    nb = Bp // block_b
    x_p = jnp.zeros((T, Bp, in_pad), jnp.float32)
    x_p = x_p.at[:, :B, :input_size].set(x_seq.astype(jnp.float32))
    h0_p = jnp.zeros((Bp, h_pad), jnp.float32)
    h0_p = h0_p.at[:B, :hidden_size].set(h0.astype(jnp.float32))

    kernel = functools.partial(rnn_seq_kernel, seq_len=T, h_pad=h_pad,
                               output_size=output_size)

    out_p, hfin_p = pl.pallas_call(
        kernel,
        out_shape=(jax.ShapeDtypeStruct((T, Bp, out_pad), jnp.float32),
                   jax.ShapeDtypeStruct((Bp, h_pad), jnp.float32)),
        grid_spec=pltpu.PrefetchScalarGridSpec(
            num_scalar_prefetch=0,
            grid=(nb,),
            in_specs=[
                # whole sequence for this batch tile (one big DMA, not T tiny ones)
                pl.BlockSpec((T, block_b, in_pad), lambda b: (0, b, 0)),
                # weights / bias: constant index_map -> VMEM-resident
                pl.BlockSpec((in_pad, n_pad), lambda b: (0, 0)),
                pl.BlockSpec((h_pad, n_pad), lambda b: (0, 0)),
                pl.BlockSpec((1, n_pad), lambda b: (0, 0)),
                # initial hidden state for this batch tile
                pl.BlockSpec((block_b, h_pad), lambda b: (b, 0)),
            ],
            out_specs=(
                pl.BlockSpec((T, block_b, out_pad), lambda b: (0, b, 0)),
                pl.BlockSpec((block_b, h_pad), lambda b: (b, 0)),
            ),
            # staging buffer for the precomputed input projection (all T steps)
            scratch_shapes=[pltpu.VMEM((T * block_b, n_pad), jnp.float32)],
        ),
        compiler_params=pltpu.CompilerParams(
            dimension_semantics=("parallel",)),
    )(x_p, prep["wx"], prep["wh"], prep["b"], h0_p)

    return out_p[:, :B, :output_size], hfin_p[:B, :hidden_size]


def rnn_forward(x, h, prep):
    """Single RNN step (matches the PyTorch module's forward). x: (B, I), h: (B, H)."""
    out_seq, h_new = rnn_sequence_forward(x[None], h, prep)
    return out_seq[0], h_new


# ----------------------------------------------------------------------------
# Parameter init mimicking nn.Linear default (uniform +/- 1/sqrt(fan_in)).
# ----------------------------------------------------------------------------
def init_params(key, input_size, hidden_size, output_size):
    k1, k2, k3, k4 = jax.random.split(key, 4)
    fan_in = input_size + hidden_size
    bound = 1.0 / jnp.sqrt(fan_in)
    return {
        "w_i2h": jax.random.uniform(k1, (hidden_size, fan_in), jnp.float32, -bound, bound),
        "b_i2h": jax.random.uniform(k2, (hidden_size,), jnp.float32, -bound, bound),
        "w_i2o": jax.random.uniform(k3, (output_size, fan_in), jnp.float32, -bound, bound),
        "b_i2o": jax.random.uniform(k4, (output_size,), jnp.float32, -bound, bound),
    }


if __name__ == "__main__":
    n_letters = 57      # len(string.ascii_letters + " .,;'")
    n_hidden = 128
    n_categories = 18
    B = 16              # batch of sequences (-> 2 batch tiles of 8: both v7x TCs busy)
    T = 8               # sequence length (characters)

    key = jax.random.PRNGKey(0)
    k_params, k_chars = jax.random.split(key)
    params = init_params(k_params, n_letters, n_hidden, n_categories)
    # f32 MXU path for tight numeric checks; pass mxu_dtype=jnp.bfloat16 on v6e/v7x.
    prep = prepare_params(params, n_letters, n_hidden, n_categories)

    # One-hot character sequences, like stacking lineToTensor() over a batch.
    char_ids = jax.random.randint(k_chars, (T, B), 0, n_letters)
    x_seq = jax.nn.one_hot(char_ids, n_letters, dtype=jnp.float32)   # (T, B, n_letters)
    h0 = jnp.zeros((B, n_hidden), jnp.float32)

    out_seq, h_final = rnn_sequence_forward(x_seq, h0, prep, block_b=8)
    jax.block_until_ready((out_seq, h_final))

    # ---- Reference check (plain JAX, exact module semantics, scanned over time) ----
    def ref_step(h, x):
        combined = jnp.concatenate([x, h], axis=1)
        h_new = combined @ params["w_i2h"].T + params["b_i2h"]
        out = jax.nn.log_softmax(combined @ params["w_i2o"].T + params["b_i2o"], axis=1)
        return h_new, out

    h_ref, out_ref_seq = lax.scan(ref_step, h0, x_seq)
    assert jnp.allclose(out_seq, out_ref_seq, atol=2e-4, rtol=2e-4), "seq output mismatch"
    assert jnp.allclose(h_final, h_ref, atol=2e-4, rtol=2e-4), "final hidden mismatch"

    # Single-step parity with the PyTorch module's forward (B=1, as in the tutorial).
    x1 = x_seq[0, :1]
    h1 = jnp.zeros((1, n_hidden), jnp.float32)
    out1, h1_new = rnn_forward(x1, h1, prep)
    h1_new_ref, out1_ref = ref_step(h1, x1)
    assert jnp.allclose(out1, out1_ref, atol=2e-4, rtol=2e-4), "step output mismatch"
    assert jnp.allclose(h1_new, h1_new_ref, atol=2e-4, rtol=2e-4), "step hidden mismatch"

    print("KERNEL_OK")
</pallas_src>

<mosaic_0001>
module attributes {stable_mosaic.version = 11 : i64} {
  func.func @rnn_seq_kernel(%arg0: i32, %arg1: memref<8x8x128xf32, #tpu.memory_space<vmem>>, %arg2: memref<128x256xf32, #tpu.memory_space<vmem>>, %arg3: memref<128x256xf32, #tpu.memory_space<vmem>>, %arg4: memref<1x256xf32, #tpu.memory_space<vmem>>, %arg5: memref<8x128xf32, #tpu.memory_space<vmem>>, %arg6: memref<8x8x128xf32, #tpu.memory_space<vmem>>, %arg7: memref<8x128xf32, #tpu.memory_space<vmem>>, %arg8: memref<64x256xf32, #tpu.memory_space<vmem>>) attributes {dimension_semantics = [#tpu.dimension_semantics<parallel>], iteration_bounds = array<i64: 2>, scalar_prefetch = 0 : i64, scratch_operands = 1 : i64, tpu.core_type = #tpu.core_type<tc>, window_params = [{transform_indices = @transform_0, window_bounds = array<i64: 8, 8, 128>}, {pipeline_mode = #tpu.pipeline_mode<synchronous>, transform_indices = @transform_1, window_bounds = array<i64: 128, 256>}, {pipeline_mode = #tpu.pipeline_mode<synchronous>, transform_indices = @transform_2, window_bounds = array<i64: 128, 256>}, {pipeline_mode = #tpu.pipeline_mode<synchronous>, transform_indices = @transform_3, window_bounds = array<i64: 1, 256>}, {transform_indices = @transform_4, window_bounds = array<i64: 8, 128>}, {transform_indices = @transform_5, window_bounds = array<i64: 8, 8, 128>}, {transform_indices = @transform_6, window_bounds = array<i64: 8, 128>}]} {
    %c0 = arith.constant 0 : index
    %c0_0 = arith.constant 0 : index
    %c0_1 = arith.constant 0 : index
    %0 = vector.load %arg1[%c0, %c0_0, %c0_1] : memref<8x8x128xf32, #tpu.memory_space<vmem>>, vector<8x8x128xf32>
    %1 = vector.shape_cast %0 : vector<8x8x128xf32> to vector<64x128xf32>
    %c0_2 = arith.constant 0 : index
    %c0_3 = arith.constant 0 : index
    %2 = vector.load %arg2[%c0_2, %c0_3] : memref<128x256xf32, #tpu.memory_space<vmem>>, vector<128x256xf32>
    %cst = arith.constant dense<0.000000e+00> : vector<64x256xf32>
    %3 = tpu.matmul %1, %2, %cst {dimension_numbers = #tpu.dot_dimension_numbers<[1], [0], [0], [1], [0, 0, 1, 1], [], []>} : vector<64x128xf32>, vector<128x256xf32>, vector<64x256xf32> -> vector<64x256xf32>
    %c0_4 = arith.constant 0 : index
    %c0_5 = arith.constant 0 : index
    %4 = vector.load %arg4[%c0_4, %c0_5] : memref<1x256xf32, #tpu.memory_space<vmem>>, vector<1x256xf32>
    %5 = vector.broadcast %4 : vector<1x256xf32> to vector<64x256xf32>
    %6 = arith.addf %3, %5 : vector<64x256xf32>
    %c0_6 = arith.constant 0 : index
    %c0_7 = arith.constant 0 : index
    %7 = vector.load %arg8[%c0_6, %c0_7] : memref<64x256xf32, #tpu.memory_space<vmem>>, vector<64x256xf32>
    tpu.vector_store %arg8[%c0_6, %c0_7], %6 {strides = array<i32>} : memref<64x256xf32, #tpu.memory_space<vmem>>, vector<64x256xf32>,
    %c0_8 = arith.constant 0 : index
    %c0_9 = arith.constant 0 : index
    %8 = vector.load %arg3[%c0_8, %c0_9] : memref<128x256xf32, #tpu.memory_space<vmem>>, vector<128x256xf32>
    %9 = tpu.iota {dimensions = array<i32: 1>} : vector<8x128xi32>
    %c0_10 = arith.constant 0 : index
    %c0_11 = arith.constant 0 : index
    %10 = vector.load %arg5[%c0_10, %c0_11] : memref<8x128xf32, #tpu.memory_space<vmem>>, vector<8x128xf32>
    %c0_i32 = arith.constant 0 : i32
    %c8_i32 = arith.constant 8 : i32
    %11 = arith.muli %c0_i32, %c8_i32 : i32
    %12 = tpu.assume_multiple %11, 8 : i32
    %cst_12 = arith.constant dense<0.000000e+00> : vector<8x256xf32>
    %13 = tpu.matmul %10, %8, %cst_12 {dimension_numbers = #tpu.dot_dimension_numbers<[1], [0], [0], [1], [0, 0, 1, 1], [], []>} : vector<8x128xf32>, vector<128x256xf32>, vector<8x256xf32> -> vector<8x256xf32>
    %14 = arith.index_cast %12 : i32 to index
    %c0_13 = arith.constant 0 : index
    %15 = vector.load %arg8[%14, %c0_13] : memref<64x256xf32, #tpu.memory_space<vmem>>, vector<8x256xf32>
    %16 = arith.addf %13, %15 : vector<8x256xf32>
    %17 = vector.extract_strided_slice %16 {offsets = [0, 0], sizes = [8, 128], strides = [1, 1]} : vector<8x256xf32> to vector<8x128xf32>
    %c18_i32 = arith.constant 18 : i32
    %18 = vector.broadcast %c18_i32 : i32 to vector<8x128xi32>
    %19 = arith.cmpi slt, %9, %18 : vector<8x128xi32>
    %20 = vector.extract_strided_slice %16 {offsets = [0, 128], sizes = [8, 128], strides = [1, 1]} : vector<8x256xf32> to vector<8x128xf32>
    %cst_14 = arith.constant -1.000000e+30 : f32
    %21 = vector.broadcast %cst_14 : f32 to vector<8x128xf32>
    %22 = arith.select %19, %20, %21 : vector<8x128xi1>, vector<8x128xf32>
    %cst_15 = arith.constant dense<0xFF800000> : vector<8xf32>
    %23 = vector.multi_reduction <maximumf>, %22, %cst_15 [1] : vector<8x128xf32> to vector<8xf32>
    %24 = vector.shape_cast %23 : vector<8xf32> to vector<8x1xf32>
    %25 = vector.broadcast %24 : vector<8x1xf32> to vector<8x128xf32>
    %26 = arith.subf %22, %25 : vector<8x128xf32>
    %27 = math.exp %26 : vector<8x128xf32>
    %cst_16 = arith.constant dense<0.000000e+00> : vector<8xf32>
    %28 = vector.multi_reduction <add>, %27, %cst_16 [1] : vector<8x128xf32> to vector<8xf32>
    %29 = vector.shape_cast %28 : vector<8xf32> to vector<8x1xf32>
    %30 = math.log %29 : vector<8x1xf32>
    %31 = vector.broadcast %30 : vector<8x1xf32> to vector<8x128xf32>
    %32 = arith.subf %26, %31 : vector<8x128xf32>
    %33 = arith.index_cast %c0_i32 : i32 to index
    %c0_17 = arith.constant 0 : index
    %c0_18 = arith.constant 0 : index
    %34 = vector.load %arg6[%33, %c0_17, %c0_18] : memref<8x8x128xf32, #tpu.memory_space<vmem>>, vector<1x8x128xf32>
    %35 = vector.shape_cast %34 : vector<1x8x128xf32> to vector<8x128xf32>
    %36 = vector.shape_cast %32 : vector<8x128xf32> to vector<1x8x128xf32>
    tpu.vector_store %arg6[%33, %c0_17, %c0_18], %36 {strides = array<i32>} : memref<8x8x128xf32, #tpu.memory_space<vmem>>, vector<1x8x128xf32>,
    %c1_i32 = arith.constant 1 : i32
    %c8_i32_19 = arith.constant 8 : i32
    %37 = arith.muli %c1_i32, %c8_i32_19 : i32
    %38 = tpu.assume_multiple %37, 8 : i32
    %cst_20 = arith.constant dense<0.000000e+00> : vector<8x256xf32>
    %39 = tpu.matmul %17, %8, %cst_20 {dimension_numbers = #tpu.dot_dimension_numbers<[1], [0], [0], [1], [0, 0, 1, 1], [], []>} : vector<8x128xf32>, vector<128x256xf32>, vector<8x256xf32> -> vector<8x256xf32>
    %40 = arith.index_cast %38 : i32 to index
    %c0_21 = arith.constant 0 : index
    %41 = vector.load %arg8[%40, %c0_21] : memref<64x256xf32, #tpu.memory_space<vmem>>, vector<8x256xf32>
    %42 = arith.addf %39, %41 : vector<8x256xf32>
    %43 = vector.extract_strided_slice %42 {offsets = [0, 0], sizes = [8, 128], strides = [1, 1]} : vector<8x256xf32> to vector<8x128xf32>
    %c18_i32_22 = arith.constant 18 : i32
    %44 = vector.broadcast %c18_i32_22 : i32 to vector<8x128xi32>
    %45 = arith.cmpi slt, %9, %44 : vector<8x128xi32>
    %46 = vector.extract_strided_slice %42 {offsets = [0, 128], sizes = [8, 128], strides = [1, 1]} : vector<8x256xf32> to vector<8x128xf32>
    %cst_23 = arith.constant -1.000000e+30 : f32
    %47 = vector.broadcast %cst_23 : f32 to vector<8x128xf32>
    %48 = arith.select %45, %46, %47 : vector<8x128xi1>, vector<8x128xf32>
    %cst_24 = arith.constant dense<0xFF800000> : vector<8xf32>
    %49 = vector.multi_reduction <maximumf>, %48, %cst_24 [1] : vector<8x128xf32> to vector<8xf32>
    %50 = vector.shape_cast %49 : vector<8xf32> to vector<8x1xf32>
    %51 = vector.broadcast %50 : vector<8x1xf32> to vector<8x128xf32>
    %52 = arith.subf %48, %51 : vector<8x128xf32>
    %53 = math.exp %52 : vector<8x128xf32>
    %cst_25 = arith.constant dense<0.000000e+00> : vector<8xf32>
    %54 = vector.multi_reduction <add>, %53, %cst_25 [1] : vector<8x128xf32> to vector<8xf32>
    %55 = vector.shape_cast %54 : vector<8xf32> to vector<8x1xf32>
    %56 = math.log %55 : vector<8x1xf32>
    %57 = vector.broadcast %56 : vector<8x1xf32> to vector<8x128xf32>
    %58 = arith.subf %52, %57 : vector<8x128xf32>
    %59 = arith.index_cast %c1_i32 : i32 to index
    %c0_26 = arith.constant 0 : index
    %c0_27 = arith.constant 0 : index
    %60 = vector.load %arg6[%59, %c0_26, %c0_27] : memref<8x8x128xf32, #tpu.memory_space<vmem>>, vector<1x8x128xf32>
    %61 = vector.shape_cast %60 : vector<1x8x128xf32> to vector<8x128xf32>
    %62 = vector.shape_cast %58 : vector<8x128xf32> to vector<1x8x128xf32>
    tpu.vector_store %arg6[%59, %c0_26, %c0_27], %62 {strides = array<i32>} : memref<8x8x128xf32, #tpu.memory_space<vmem>>, vector<1x8x128xf32>,
    %c2_i32 = arith.constant 2 : i32
    %c8_i32_28 = arith.constant 8 : i32
    %63 = arith.muli %c2_i32, %c8_i32_28 : i32
    %64 = tpu.assume_multiple %63, 8 : i32
    %cst_29 = arith.constant dense<0.000000e+00> : vector<8x256xf32>
    %65 = tpu.matmul %43, %8, %cst_29 {dimension_numbers = #tpu.dot_dimension_numbers<[1], [0], [0], [1], [0, 0, 1, 1], [], []>} : vector<8x128xf32>, vector<128x256xf32>, vector<8x256xf32> -> vector<8x256xf32>
    %66 = arith.index_cast %64 : i32 to index
    %c0_30 = arith.constant 0 : index
    %67 = vector.load %arg8[%66, %c0_30] : memref<64x256xf32, #tpu.memory_space<vmem>>, vector<8x256xf32>
    %68 = arith.addf %65, %67 : vector<8x256xf32>
    %69 = vector.extract_strided_slice %68 {offsets = [0, 0], sizes = [8, 128], strides = [1, 1]} : vector<8x256xf32> to vector<8x128xf32>
    %c18_i32_31 = arith.constant 18 : i32
    %70 = vector.broadcast %c18_i32_31 : i32 to vector<8x128xi32>
    %71 = arith.cmpi slt, %9, %70 : vector<8x128xi32>
    %72 = vector.extract_strided_slice %68 {offsets = [0, 128], sizes = [8, 128], strides = [1, 1]} : vector<8x256xf32> to vector<8x128xf32>
    %cst_32 = arith.constant -1.000000e+30 : f32
    %73 = vector.broadcast %cst_32 : f32 to vector<8x128xf32>
    %74 = arith.select %71, %72, %73 : vector<8x128xi1>, vector<8x128xf32>
    %cst_33 = arith.constant dense<0xFF800000> : vector<8xf32>
    %75 = vector.multi_reduction <maximumf>, %74, %cst_33 [1] : vector<8x128xf32> to vector<8xf32>
    %76 = vector.shape_cast %75 : vector<8xf32> to vector<8x1xf32>
    %77 = vector.broadcast %76 : vector<8x1xf32> to vector<8x128xf32>
    %78 = arith.subf %74, %77 : vector<8x128xf32>
    %79 = math.exp %78 : vector<8x128xf32>
    %cst_34 = arith.constant dense<0.000000e+00> : vector<8xf32>
    %80 = vector.multi_reduction <add>, %79, %cst_34 [1] : vector<8x128xf32> to vector<8xf32>
    %81 = vector.shape_cast %80 : vector<8xf32> to vector<8x1xf32>
    %82 = math.log %81 : vector<8x1xf32>
    %83 = vector.broadcast %82 : vector<8x1xf32> to vector<8x128xf32>
    %84 = arith.subf %78, %83 : vector<8x128xf32>
    %85 = arith.index_cast %c2_i32 : i32 to index
    %c0_35 = arith.constant 0 : index
    %c0_36 = arith.constant 0 : index
    %86 = vector.load %arg6[%85, %c0_35, %c0_36] : memref<8x8x128xf32, #tpu.memory_space<vmem>>, vector<1x8x128xf32>
    %87 = vector.shape_cast %86 : vector<1x8x128xf32> to vector<8x128xf32>
    %88 = vector.shape_cast %84 : vector<8x128xf32> to vector<1x8x128xf32>
    tpu.vector_store %arg6[%85, %c0_35, %c0_36], %88 {strides = array<i32>} : memref<8x8x128xf32, #tpu.memory_space<vmem>>, vector<1x8x128xf32>,
    %c3_i32 = arith.constant 3 : i32
    %c8_i32_37 = arith.constant 8 : i32
    %89 = arith.muli %c3_i32, %c8_i32_37 : i32
    %90 = tpu.assume_multiple %89, 8 : i32
    %cst_38 = arith.constant dense<0.000000e+00> : vector<8x256xf32>
    %91 = tpu.matmul %69, %8, %cst_38 {dimension_numbers = #tpu.dot_dimension_numbers<[1], [0], [0], [1], [0, 0, 1, 1], [], []>} : vector<8x128xf32>, vector<128x256xf32>, vector<8x256xf32> -> vector<8x256xf32>
    %92 = arith.index_cast %90 : i32 to index
    %c0_39 = arith.constant 0 : index
    %93 = vector.load %arg8[%92, %c0_39] : memref<64x256xf32, #tpu.memory_space<vmem>>, vector<8x256xf32>
    %94 = arith.addf %91, %93 : vector<8x256xf32>
    %95 = vector.extract_strided_slice %94 {offsets = [0, 0], sizes = [8, 128], strides = [1, 1]} : vector<8x256xf32> to vector<8x128xf32>
    %c18_i32_40 = arith.constant 18 : i32
    %96 = vector.broadcast %c18_i32_40 : i32 to vector<8x128xi32>
    %97 = arith.cmpi slt, %9, %96 : vector<8x128xi32>
    %98 = vector.extract_strided_slice %94 {offsets = [0, 128], sizes = [8, 128], strides = [1, 1]} : vector<8x256xf32> to vector<8x128xf32>
    %cst_41 = arith.constant -1.000000e+30 : f32
    %99 = vector.broadcast %cst_41 : f32 to vector<8x128xf32>
    %100 = arith.select %97, %98, %99 : vector<8x128xi1>, vector<8x128xf32>
    %cst_42 = arith.constant dense<0xFF800000> : vector<8xf32>
    %101 = vector.multi_reduction <maximumf>, %100, %cst_42 [1] : vector<8x128xf32> to vector<8xf32>
    %102 = vector.shape_cast %101 : vector<8xf32> to vector<8x1xf32>
    %103 = vector.broadcast %102 : vector<8x1xf32> to vector<8x128xf32>
    %104 = arith.subf %100, %103 : vector<8x128xf32>
    %105 = math.exp %104 : vector<8x128xf32>
    %cst_43 = arith.constant dense<0.000000e+00> : vector<8xf32>
    %106 = vector.multi_reduction <add>, %105, %cst_43 [1] : vector<8x128xf32> to vector<8xf32>
    %107 = vector.shape_cast %106 : vector<8xf32> to vector<8x1xf32>
    %108 = math.log %107 : vector<8x1xf32>
    %109 = vector.broadcast %108 : vector<8x1xf32> to vector<8x128xf32>
    %110 = arith.subf %104, %109 : vector<8x128xf32>
    %111 = arith.index_cast %c3_i32 : i32 to index
    %c0_44 = arith.constant 0 : index
    %c0_45 = arith.constant 0 : index
    %112 = vector.load %arg6[%111, %c0_44, %c0_45] : memref<8x8x128xf32, #tpu.memory_space<vmem>>, vector<1x8x128xf32>
    %113 = vector.shape_cast %112 : vector<1x8x128xf32> to vector<8x128xf32>
    %114 = vector.shape_cast %110 : vector<8x128xf32> to vector<1x8x128xf32>
    tpu.vector_store %arg6[%111, %c0_44, %c0_45], %114 {strides = array<i32>} : memref<8x8x128xf32, #tpu.memory_space<vmem>>, vector<1x8x128xf32>,
    %c4_i32 = arith.constant 4 : i32
    %c8_i32_46 = arith.constant 8 : i32
    %115 = arith.muli %c4_i32, %c8_i32_46 : i32
    %116 = tpu.assume_multiple %115, 8 : i32
    %cst_47 = arith.constant dense<0.000000e+00> : vector<8x256xf32>
    %117 = tpu.matmul %95, %8, %cst_47 {dimension_numbers = #tpu.dot_dimension_numbers<[1], [0], [0], [1], [0, 0, 1, 1], [], []>} : vector<8x128xf32>, vector<128x256xf32>, vector<8x256xf32> -> vector<8x256xf32>
    %118 = arith.index_cast %116 : i32 to index
    %c0_48 = arith.constant 0 : index
    %119 = vector.load %arg8[%118, %c0_48] : memref<64x256xf32, #tpu.memory_space<vmem>>, vector<8x256xf32>
    %120 = arith.addf %117, %119 : vector<8x256xf32>
    %121 = vector.extract_strided_slice %120 {offsets = [0, 0], sizes = [8, 128], strides = [1, 1]} : vector<8x256xf32> to vector<8x128xf32>
    %c18_i32_49 = arith.constant 18 : i32
    %122 = vector.broadcast %c18_i32_49 : i32 to vector<8x128xi32>
    %123 = arith.cmpi slt, %9, %122 : vector<8x128xi32>
    %124 = vector.extract_strided_slice %120 {offsets = [0, 128], sizes = [8, 128], strides = [1, 1]} : vector<8x256xf32> to vector<8x128xf32>
    %cst_50 = arith.constant -1.000000e+30 : f32
    %125 = vector.broadcast %cst_50 : f32 to vector<8x128xf32>
    %126 = arith.select %123, %124, %125 : vector<8x128xi1>, vector<8x128xf32>
    %cst_51 = arith.constant dense<0xFF800000> : vector<8xf32>
    %127 = vector.multi_reduction <maximumf>, %126, %cst_51 [1] : vector<8x128xf32> to vector<8xf32>
    %128 = vector.shape_cast %127 : vector<8xf32> to vector<8x1xf32>
    %129 = vector.broadcast %128 : vector<8x1xf32> to vector<8x128xf32>
    %130 = arith.subf %126, %129 : vector<8x128xf32>
    %131 = math.exp %130 : vector<8x128xf32>
    %cst_52 = arith.constant dense<0.000000e+00> : vector<8xf32>
    %132 = vector.multi_reduction <add>, %131, %cst_52 [1] : vector<8x128xf32> to vector<8xf32>
    %133 = vector.shape_cast %132 : vector<8xf32> to vector<8x1xf32>
    %134 = math.log %133 : vector<8x1xf32>
    %135 = vector.broadcast %134 : vector<8x1xf32> to vector<8x128xf32>
    %136 = arith.subf %130, %135 : vector<8x128xf32>
    %137 = arith.index_cast %c4_i32 : i32 to index
    %c0_53 = arith.constant 0 : index
    %c0_54 = arith.constant 0 : index
    %138 = vector.load %arg6[%137, %c0_53, %c0_54] : memref<8x8x128xf32, #tpu.memory_space<vmem>>, vector<1x8x128xf32>
    %139 = vector.shape_cast %138 : vector<1x8x128xf32> to vector<8x128xf32>
    %140 = vector.shape_cast %136 : vector<8x128xf32> to vector<1x8x128xf32>
    tpu.vector_store %arg6[%137, %c0_53, %c0_54], %140 {strides = array<i32>} : memref<8x8x128xf32, #tpu.memory_space<vmem>>, vector<1x8x128xf32>,
    %c5_i32 = arith.constant 5 : i32
    %c8_i32_55 = arith.constant 8 : i32
    %141 = arith.muli %c5_i32, %c8_i32_55 : i32
    %142 = tpu.assume_multiple %141, 8 : i32
    %cst_56 = arith.constant dense<0.000000e+00> : vector<8x256xf32>
    %143 = tpu.matmul %121, %8, %cst_56 {dimension_numbers = #tpu.dot_dimension_numbers<[1], [0], [0], [1], [0, 0, 1, 1], [], []>} : vector<8x128xf32>, vector<128x256xf32>, vector<8x256xf32> -> vector<8x256xf32>
    %144 = arith.index_cast %142 : i32 to index
    %c0_57 = arith.constant 0 : index
    %145 = vector.load %arg8[%144, %c0_57] : memref<64x256xf32, #tpu.memory_space<vmem>>, vector<8x256xf32>
    %146 = arith.addf %143, %145 : vector<8x256xf32>
    %147 = vector.extract_strided_slice %146 {offsets = [0, 0], sizes = [8, 128], strides = [1, 1]} : vector<8x256xf32> to vector<8x128xf32>
    %c18_i32_58 = arith.constant 18 : i32
    %148 = vector.broadcast %c18_i32_58 : i32 to vector<8x128xi32>
    %149 = arith.cmpi slt, %9, %148 : vector<8x128xi32>
    %150 = vector.extract_strided_slice %146 {offsets = [0, 128], sizes = [8, 128], strides = [1, 1]} : vector<8x256xf32> to vector<8x128xf32>
    %cst_59 = arith.constant -1.000000e+30 : f32
    %151 = vector.broadcast %cst_59 : f32 to vector<8x128xf32>
    %152 = arith.select %149, %150, %151 : vector<8x128xi1>, vector<8x128xf32>
    %cst_60 = arith.constant dense<0xFF800000> : vector<8xf32>
    %153 = vector.multi_reduction <maximumf>, %152, %cst_60 [1] : vector<8x128xf32> to vector<8xf32>
    %154 = vector.shape_cast %153 : vector<8xf32> to vector<8x1xf32>
    %155 = vector.broadcast %154 : vector<8x1xf32> to vector<8x128xf32>
    %156 = arith.subf %152, %155 : vector<8x128xf32>
    %157 = math.exp %156 : vector<8x128xf32>
    %cst_61 = arith.constant dense<0.000000e+00> : vector<8xf32>
    %158 = vector.multi_reduction <add>, %157, %cst_61 [1] : vector<8x128xf32> to vector<8xf32>
    %159 = vector.shape_cast %158 : vector<8xf32> to vector<8x1xf32>
    %160 = math.log %159 : vector<8x1xf32>
    %161 = vector.broadcast %160 : vector<8x1xf32> to vector<8x128xf32>
    %162 = arith.subf %156, %161 : vector<8x128xf32>
    %163 = arith.index_cast %c5_i32 : i32 to index
    %c0_62 = arith.constant 0 : index
    %c0_63 = arith.constant 0 : index
    %164 = vector.load %arg6[%163, %c0_62, %c0_63] : memref<8x8x128xf32, #tpu.memory_space<vmem>>, vector<1x8x128xf32>
    %165 = vector.shape_cast %164 : vector<1x8x128xf32> to vector<8x128xf32>
    %166 = vector.shape_cast %162 : vector<8x128xf32> to vector<1x8x128xf32>
    tpu.vector_store %arg6[%163, %c0_62, %c0_63], %166 {strides = array<i32>} : memref<8x8x128xf32, #tpu.memory_space<vmem>>, vector<1x8x128xf32>,
    %c6_i32 = arith.constant 6 : i32
    %c8_i32_64 = arith.constant 8 : i32
    %167 = arith.muli %c6_i32, %c8_i32_64 : i32
    %168 = tpu.assume_multiple %167, 8 : i32
    %cst_65 = arith.constant dense<0.000000e+00> : vector<8x256xf32>
    %169 = tpu.matmul %147, %8, %cst_65 {dimension_numbers = #tpu.dot_dimension_numbers<[1], [0], [0], [1], [0, 0, 1, 1], [], []>} : vector<8x128xf32>, vector<128x256xf32>, vector<8x256xf32> -> vector<8x256xf32>
    %170 = arith.index_cast %168 : i32 to index
    %c0_66 = arith.constant 0 : index
    %171 = vector.load %arg8[%170, %c0_66] : memref<64x256xf32, #tpu.memory_space<vmem>>, vector<8x256xf32>
    %172 = arith.addf %169, %171 : vector<8x256xf32>
    %173 = vector.extract_strided_slice %172 {offsets = [0, 0], sizes = [8, 128], strides = [1, 1]} : vector<8x256xf32> to vector<8x128xf32>
    %c18_i32_67 = arith.constant 18 : i32
    %174 = vector.broadcast %c18_i32_67 : i32 to vector<8x128xi32>
    %175 = arith.cmpi slt, %9, %174 : vector<8x128xi32>
    %176 = vector.extract_strided_slice %172 {offsets = [0, 128], sizes = [8, 128], strides = [1, 1]} : vector<8x256xf32> to vector<8x128xf32>
    %cst_68 = arith.constant -1.000000e+30 : f32
    %177 = vector.broadcast %cst_68 : f32 to vector<8x128xf32>
    %178 = arith.select %175, %176, %177 : vector<8x128xi1>, vector<8x128xf32>
    %cst_69 = arith.constant dense<0xFF800000> : vector<8xf32>
    %179 = vector.multi_reduction <maximumf>, %178, %cst_69 [1] : vector<8x128xf32> to vector<8xf32>
    %180 = vector.shape_cast %179 : vector<8xf32> to vector<8x1xf32>
    %181 = vector.broadcast %180 : vector<8x1xf32> to vector<8x128xf32>
    %182 = arith.subf %178, %181 : vector<8x128xf32>
    %183 = math.exp %182 : vector<8x128xf32>
    %cst_70 = arith.constant dense<0.000000e+00> : vector<8xf32>
    %184 = vector.multi_reduction <add>, %183, %cst_70 [1] : vector<8x128xf32> to vector<8xf32>
    %185 = vector.shape_cast %184 : vector<8xf32> to vector<8x1xf32>
    %186 = math.log %185 : vector<8x1xf32>
    %187 = vector.broadcast %186 : vector<8x1xf32> to vector<8x128xf32>
    %188 = arith.subf %182, %187 : vector<8x128xf32>
    %189 = arith.index_cast %c6_i32 : i32 to index
    %c0_71 = arith.constant 0 : index
    %c0_72 = arith.constant 0 : index
    %190 = vector.load %arg6[%189, %c0_71, %c0_72] : memref<8x8x128xf32, #tpu.memory_space<vmem>>, vector<1x8x128xf32>
    %191 = vector.shape_cast %190 : vector<1x8x128xf32> to vector<8x128xf32>
    %192 = vector.shape_cast %188 : vector<8x128xf32> to vector<1x8x128xf32>
    tpu.vector_store %arg6[%189, %c0_71, %c0_72], %192 {strides = array<i32>} : memref<8x8x128xf32, #tpu.memory_space<vmem>>, vector<1x8x128xf32>,
    %c7_i32 = arith.constant 7 : i32
    %c8_i32_73 = arith.constant 8 : i32
    %193 = arith.muli %c7_i32, %c8_i32_73 : i32
    %194 = tpu.assume_multiple %193, 8 : i32
    %cst_74 = arith.constant dense<0.000000e+00> : vector<8x256xf32>
    %195 = tpu.matmul %173, %8, %cst_74 {dimension_numbers = #tpu.dot_dimension_numbers<[1], [0], [0], [1], [0, 0, 1, 1], [], []>} : vector<8x128xf32>, vector<128x256xf32>, vector<8x256xf32> -> vector<8x256xf32>
    %196 = arith.index_cast %194 : i32 to index
    %c0_75 = arith.constant 0 : index
    %197 = vector.load %arg8[%196, %c0_75] : memref<64x256xf32, #tpu.memory_space<vmem>>, vector<8x256xf32>
    %198 = arith.addf %195, %197 : vector<8x256xf32>
    %199 = vector.extract_strided_slice %198 {offsets = [0, 0], sizes = [8, 128], strides = [1, 1]} : vector<8x256xf32> to vector<8x128xf32>
    %c18_i32_76 = arith.constant 18 : i32
    %200 = vector.broadcast %c18_i32_76 : i32 to vector<8x128xi32>
    %201 = arith.cmpi slt, %9, %200 : vector<8x128xi32>
    %202 = vector.extract_strided_slice %198 {offsets = [0, 128], sizes = [8, 128], strides = [1, 1]} : vector<8x256xf32> to vector<8x128xf32>
    %cst_77 = arith.constant -1.000000e+30 : f32
    %203 = vector.broadcast %cst_77 : f32 to vector<8x128xf32>
    %204 = arith.select %201, %202, %203 : vector<8x128xi1>, vector<8x128xf32>
    %cst_78 = arith.constant dense<0xFF800000> : vector<8xf32>
    %205 = vector.multi_reduction <maximumf>, %204, %cst_78 [1] : vector<8x128xf32> to vector<8xf32>
    %206 = vector.shape_cast %205 : vector<8xf32> to vector<8x1xf32>
    %207 = vector.broadcast %206 : vector<8x1xf32> to vector<8x128xf32>
    %208 = arith.subf %204, %207 : vector<8x128xf32>
    %209 = math.exp %208 : vector<8x128xf32>
    %cst_79 = arith.constant dense<0.000000e+00> : vector<8xf32>
    %210 = vector.multi_reduction <add>, %209, %cst_79 [1] : vector<8x128xf32> to vector<8xf32>
    %211 = vector.shape_cast %210 : vector<8xf32> to vector<8x1xf32>
    %212 = math.log %211 : vector<8x1xf32>
    %213 = vector.broadcast %212 : vector<8x1xf32> to vector<8x128xf32>
    %214 = arith.subf %208, %213 : vector<8x128xf32>
    %215 = arith.index_cast %c7_i32 : i32 to index
    %c0_80 = arith.constant 0 : index
    %c0_81 = arith.constant 0 : index
    %216 = vector.load %arg6[%215, %c0_80, %c0_81] : memref<8x8x128xf32, #tpu.memory_space<vmem>>, vector<1x8x128xf32>
    %217 = vector.shape_cast %216 : vector<1x8x128xf32> to vector<8x128xf32>
    %218 = vector.shape_cast %214 : vector<8x128xf32> to vector<1x8x128xf32>
    tpu.vector_store %arg6[%215, %c0_80, %c0_81], %218 {strides = array<i32>} : memref<8x8x128xf32, #tpu.memory_space<vmem>>, vector<1x8x128xf32>,
    %c8_i32_82 = arith.constant 8 : i32
    %c0_83 = arith.constant 0 : index
    %c0_84 = arith.constant 0 : index
    %219 = vector.load %arg7[%c0_83, %c0_84] : memref<8x128xf32, #tpu.memory_space<vmem>>, vector<8x128xf32>
    tpu.vector_store %arg7[%c0_83, %c0_84], %199 {strides = array<i32>} : memref<8x128xf32, #tpu.memory_space<vmem>>, vector<8x128xf32>,
    return
  }
  func.func @transform_0(%arg0: i32) -> (i32, i32, i32) {
    %c0_i32 = arith.constant 0 : i32
    %c0_i32_0 = arith.constant 0 : i32
    %c0_i32_1 = arith.constant 0 : i32
    return %c0_i32, %arg0, %c0_i32_0 : i32, i32, i32
  }
  func.func @transform_1(%arg0: i32) -> (i32, i32) {
    %c0_i32 = arith.constant 0 : i32
    %c0_i32_0 = arith.constant 0 : i32
    %c0_i32_1 = arith.constant 0 : i32
    return %c0_i32, %c0_i32_0 : i32, i32
  }
  func.func @transform_2(%arg0: i32) -> (i32, i32) {
    %c0_i32 = arith.constant 0 : i32
    %c0_i32_0 = arith.constant 0 : i32
    %c0_i32_1 = arith.constant 0 : i32
    return %c0_i32, %c0_i32_0 : i32, i32
  }
  func.func @transform_3(%arg0: i32) -> (i32, i32) {
    %c0_i32 = arith.constant 0 : i32
    %c0_i32_0 = arith.constant 0 : i32
    %c0_i32_1 = arith.constant 0 : i32
    return %c0_i32, %c0_i32_0 : i32, i32
  }
  func.func @transform_4(%arg0: i32) -> (i32, i32) {
    %c0_i32 = arith.constant 0 : i32
    %c0_i32_0 = arith.constant 0 : i32
    return %arg0, %c0_i32 : i32, i32
  }
  func.func @transform_5(%arg0: i32) -> (i32, i32, i32) {
    %c0_i32 = arith.constant 0 : i32
    %c0_i32_0 = arith.constant 0 : i32
    %c0_i32_1 = arith.constant 0 : i32
    return %c0_i32, %arg0, %c0_i32_0 : i32, i32, i32
  }
  func.func @transform_6(%arg0: i32) -> (i32, i32) {
    %c0_i32 = arith.constant 0 : i32
    %c0_i32_0 = arith.constant 0 : i32
    return %arg0, %c0_i32 : i32, i32
  }
}

</mosaic_0001>

<bundles_post_ra>
// kernel: tpu_custom_call.1
= control target key start
LH: loop header
LB: loop body
LE: loop exit
PB: predicated region body
PF: predicated region fallthrough
CT: control target
= control target key end

     0   :  { %s2596_s0 = inlined_call_operand.hbm [shape: f32[8,16,128], index: 0, kind: input, shape index: {}]   ;;  %s2597_s1 = inlined_call_operand.hbm [shape: f32[128,256], index: 1, kind: input, shape index: {}]   ;;  %s2598_s2 = inlined_call_operand.hbm [shape: f32[128,256], index: 2, kind: input, shape index: {}]   ;;  %s2599_s3 = inlined_call_operand.vmem [shape: f32[1,256], index: 3, kind: input, shape index: {}]   ;;  %s2600_s4 = inlined_call_operand.hbm [shape: f32[16,128], index: 4, kind: input, shape index: {}]   ;;  %s2601_s5 = inlined_call_operand.hbm [shape: f32[8,16,128], index: 5, kind: output, shape index: {0}]   ;;  %s2602_s6 = inlined_call_operand.hbm [shape: f32[16,128], index: 6, kind: output, shape index: {1}]  }
   0x1   :  { %2609 = sst [smem:[#allocation20_spill]] %s2596_s0 }
   0x2   :  { %2610 = sst [smem:[#allocation21_spill]] %s2597_s1 }
   0x3   :  { %2611 = sst [smem:[#allocation22_spill]] %s2598_s2 }
   0x4   :  { %12 = vsyncpa [#allocation4], 0 }
   0x5   :  { %14 = vsyncpa [#allocation4 + $0x1], 0 }
   0x6   :  { %15 = vsyncpa [#allocation7], 0 }
   0x7   :  { %16 = vsyncpa [#allocation10], 0 }
   0x8   :  { %18 = vsyncpa [#allocation10 + $0x1], 0 }
   0x9   :  { %19 = vsyncpa [#allocation5], 0 }
   0xa   :  { %21 = vsyncpa [#allocation5 + $0x1], 0 }
   0xb   :  { %22 = vsyncpa [#allocation13], 0 }
   0xc   :  { %24 = vsyncpa [#allocation13 + $0x1], 0  ;;  %s1867_s21 = smov 0   ;;  %s1869_s22 = smov 0  }
   0xd   :  { %s1871_s23 = smov 0   ;;  %s1873_s24 = smov 0  }
   0xe LB: > { %s1888_s25 = sadd.s32 4294967295, %s1816_s24   ;;  %s1460_s26 = sadd.s32 4294967294, %s1816_s24   ;;  %s1816_s24 = sphi %s1873_s24, %s2636_s24   ;;  %s1812_s23 = sphi %s1871_s23, %s2635_s23   ;;  %s1808_s22 = sphi %s1869_s22, %s2634_s22   ;;  %s1804_s21 = sphi %s1867_s21, %s2633_s21  }
   0xf   : > { %s1892_s27 = sadd.s32 1, %s1816_s24   ;;  %s37_s28 = sadd.s32 1, %s1812_s23 }
  0x10   : > { %s34_s29 = ssub.s32 %s1816_s24, %s1892_s27  ;;  %p44_p0 = scmp.ne.s32.totalorder %s1812_s23, %s1808_s22 }
  0x11   : > { %p35_p1 = scmp.eq.s32.totalorder %s34_s29, 0  ;;  %p45_p2 = scmp.eq.s32.totalorder %s1816_s24, 0 }
  0x12   : > { %p50_p3 = scmp.ne.s32.totalorder %s1808_s22, %s1804_s21  ;;  %p2604_p4 = scmp.eq.s32.totalorder %s1888_s25, 0 }
  0x13   : > { %s1904_s30 = scalar_select %p35_p1, %s1812_s23, %s37_s28  }
  0x14   : > { %p1906_p5 = por %p45_p2, %p44_p0  ;;  %p1912_p6 = por %p2604_p4, %p50_p3 }
  0x15   : > { %2612 = sst [smem:[#allocation19_spill]] %s1904_s30  ;;  %p163_p7 = scmp.eq.s32.totalorder %s1888_s25, 1 }
  0x16   : > { %s2614_s8 = scalar_select %p1912_p6, 1, 0 }
  0x17   : > { %p169_p8 = scmp.eq.s32.totalorder %s1460_s26, 1  ;;  %p1461_p9 = scmp.ge.s32.totalorder %s1816_s24, 1 }
  0x18   : > { %p202_p10 = scmp.lt.s32.totalorder %s1816_s24, 3  ;;  %p1919_p11 = por %p163_p7, %p44_p0 }
  0x19   : > { %p1923_p12 = por %p169_p8, %p50_p3  ;;  %s1818_s12 = smov [#allocation6]  }
  0x1a   : > { %s2615_s9 = scalar_select %p1919_p11, 1, 0 }
  0x1b   : > { %s2616_s10 = scalar_select %p1923_p12, 1, 0 }
  0x1c   : > { %p1927_p13 = pnand %p1461_p9, %p202_p10  ;;  %s214_s13 = sshll.u32 %s1818_s12, 4  ;;  %s215_s13 = int_to_ptr.vmem [resolvable:$true] %s214_s13 }
  0x1d   : > { %p1528_p3 = scmp.lt.s32.totalorder %s1816_s24, 2  ;;  %s1819_s15 = smov [#allocation8]  }
  0x1e   : > { %s2617_s11 = scalar_select %p1927_p13, 1, 0 }
  0x1f   : > { %p1505_p1 = pneg %p1927_p13  ;;  %s227_s16 = sshll.u32 %s1819_s15, 4  ;;  %s228_s16 = int_to_ptr.vmem [resolvable:$true] %s227_s16 }
  0x20   : > { %s1617_s17 = scalar_lea.vmem %s215_s13, 4096  ;;  %p1625_p12 = scmp.lt.s32.totalorder %s215_s13, %s215_s13 }
  0x21   : > { %p1935_p2 = pnand %p1505_p1, %p2604_p4  ;;  %p1618_p8 = scmp.ne.s32.totalorder %s215_s13, %s1617_s17 }
  0x22   : > { %p1626_p11 = scmp.lt.s32.totalorder %s1617_s17, %s1617_s17 }
  0x23   : > { %p1608_p7 = pneg %p1935_p2 }
  0x24   : > { %p1627_p1 = por %p1626_p11, %p1625_p12 }
  0x25   : > { %p1620_p9 = pnand %p1618_p8, %p1608_p7 }
  0x27   : > { %p1621_p10 = pneg %p1620_p9 }
  0x29   : > { %p1628_p4 = pnand %p1627_p1, %p1621_p10 }
  0x2b   : > { %1631 = shalt.err (!%p1628_p4)
}
  0x2c   : > { %s2606_s18 = smov 256   ;;  %s1821_s19 = smov 16  }
  0x2d   : > { %s2619_s1 = sld [smem:[#allocation21_spill]]  ;;  %p1957_p8 = pnand %p1528_p3, %p1906_p5 }
  0x2e   : > { %s1643_s29 = scalar_lea.vmem %s228_s16, 4096  ;;  %p1651_p9 = scmp.lt.s32.totalorder %s228_s16, %s228_s16 }
  0x2f   : > { %p1644_p4 = scmp.ne.s32.totalorder %s228_s16, %s1643_s29  ;;  %p1652_p10 = scmp.lt.s32.totalorder %s1643_s29, %s1643_s29 }
  0x31   : > { %p1646_p11 = pnand %p1644_p4, %p1608_p7  ;;  %p1653_p1 = por %p1652_p10, %p1651_p9 }
  0x33   : > { %1508 = dma.hbm_to_vmem [thread:$0]  (!%p1935_p2), %s2619_s1, 4096, %s215_s13, [#allocation7], %s2606_s18, %s2606_s18, %s1821_s19  }
  0x34   : > { %p1647_p12 = pneg %p1646_p11 }
  0x36   : > { %p1654_p0 = pnand %p1653_p1, %p1647_p12 }
  0x38   : > { %1657 = shalt.err (!%p1654_p0)
}
  0x39   : > { %s2621_s2 = sld [smem:[#allocation22_spill]]  ;;  %s1972_s13 = sand.u32 1, %s1812_s23  }
  0x3a   : > { %s1465_s15 = sshll.u32 %s1972_s13, 6  ;;  %s2605_s17 = sshll.u32 %s1816_s24, 7 }
  0x3b   : > { %s2622_s0 = sld [smem:[#allocation20_spill]]  ;;  %s248_s29 = scalar_lea.vmem [#allocation3], %s1465_s15 }
  0x3c   : > { %s254_s7 = sshll.u32 %s248_s29, 4  ;;  %s1983_s7 = int_to_ptr.vmem [resolvable:$true] %s254_s7 }
  0x3f   : > { %1511 = dma.hbm_to_vmem [thread:$0]  (!%p1935_p2), %s2621_s2, 4096, %s228_s16, [#allocation7], %s2606_s18, %s2606_s18, %s1821_s19  }
  0x40   : > { %s245_s16 = scalar_lea.sflag [#allocation4], %s1972_s13  ;;  %p1660_p2 = pneg %p1957_p8 }
  0x41   : > { %s1981_s26 = scalar_lea.hbm %s2622_s0, %s2605_s17  ;;  %s1663_s14 = scalar_lea.hbm %s2622_s0, 2048 }
  0x42   : > { %s1658_s19 = scalar_lea.hbm %s1981_s26, 1024  ;;  %p1664_p7 = scmp.lt.s32.totalorder %s1981_s26, %s2622_s0 }
  0x43   : > { %p1659_p5 = scmp.ne.s32.totalorder %s1981_s26, %s1658_s19  ;;  %p1665_p4 = scmp.lt.s32.totalorder %s1663_s14, %s1658_s19 }
  0x45   : > { %p1661_p0 = pnand %p1660_p2, %p1659_p5  ;;  %p1666_p11 = por %p1665_p4, %p1664_p7 }
  0x47   : > { %p1662_p3 = pneg %p1661_p0 }
  0x49   : > { %p1667_p12 = pnand %p1666_p11, %p1662_p3 }
  0x4b   : > { %1670 = shalt.err (!%p1667_p12)
}
  0x4c   : > { %s1671_s15 = scalar_lea.vmem %s1983_s7, 1024  ;;  %s1822_s29 = smov [#allocation3]  }
  0x4d   : > { %p1672_p9 = scmp.ne.s32.totalorder %s1983_s7, %s1671_s15  ;;  %s1676_s12 = sshll.u32 %s1822_s29, 4  ;;  %s1677_s12 = int_to_ptr.vmem [resolvable:$false] %s1676_s12 }
  0x4e   : > { %s1678_s20 = scalar_lea.vmem %s1677_s12, 2048  ;;  %p1679_p5 = scmp.lt.s32.totalorder %s1983_s7, %s1677_s12 }
  0x4f   : > { %p1674_p10 = pnand %p1672_p9, %p1660_p2  ;;  %p1680_p0 = scmp.lt.s32.totalorder %s1678_s20, %s1671_s15 }
  0x51   : > { %p1675_p1 = pneg %p1674_p10  ;;  %p1681_p6 = por %p1680_p0, %p1679_p5 }
  0x53   : > { %p1682_p7 = pnand %p1681_p6, %p1675_p1 }
  0x55   : > { %1685 = shalt.err (!%p1682_p7)
}
  0x56   : > { %s1823_s18 = smov 128   ;;  %s1824_s17 = smov 8  }
  0x57   : > { %s2623_s19 = smov 256   ;;  %s1467_s14 = sshll.u32 %s1972_s13, 3 }
  0x58   : > { %1515 = dma.hbm_to_vmem [thread:$0]  (!%p1957_p8), %s1981_s26, 1024, %s1983_s7, %s245_s16, %s2623_s19, %s1823_s18, %s1824_s17  }
  0x59   : > { %s2624_s29 = sshll.u32 %s1816_s24, 7  ;;  %s268_s0 = scalar_lea.vmem [#allocation9], %s1467_s14 }
  0x5a   : > { %s2019_s20 = scalar_lea.hbm %s2600_s4, %s2624_s29  ;;  %s275_s1 = sshll.u32 %s268_s0, 4  ;;  %s276_s1 = int_to_ptr.vmem [resolvable:$true] %s275_s1 }
  0x5b   : > { %s265_s2 = scalar_lea.sflag [#allocation10], %s1972_s13  ;;  %s1686_s30 = scalar_lea.hbm %s2019_s20, 128 }
  0x5c   : > { %p1687_p6 = scmp.ne.s32.totalorder %s2019_s20, %s1686_s30  ;;  %s1691_s16 = scalar_lea.hbm %s2600_s4, 256 }
  0x5d   : > { %p1692_p11 = scmp.lt.s32.totalorder %s2019_s20, %s2600_s4  ;;  %p1693_p12 = scmp.lt.s32.totalorder %s1691_s16, %s1686_s30 }
  0x5e   : > { %p1689_p3 = pnand %p1687_p6, %p1660_p2 }
  0x5f   : > { %p1694_p9 = por %p1693_p12, %p1692_p11 }
  0x60   : > { %p1690_p4 = pneg %p1689_p3 }
  0x62   : > { %p1695_p10 = pnand %p1694_p9, %p1690_p4 }
  0x64   : > { %1698 = shalt.err (!%p1695_p10)
}
  0x65   : > { %s1699_s0 = scalar_lea.vmem %s276_s1, 128  ;;  %s1825_s13 = smov [#allocation9]  }
  0x66   : > { %p1700_p1 = scmp.ne.s32.totalorder %s276_s1, %s1699_s0  ;;  %s1704_s19 = sshll.u32 %s1825_s13, 4  ;;  %s1705_s19 = int_to_ptr.vmem [resolvable:$false] %s1704_s19 }
  0x67   : > { %s1706_s14 = scalar_lea.vmem %s1705_s19, 256  ;;  %p1707_p7 = scmp.lt.s32.totalorder %s276_s1, %s1705_s19 }
  0x68   : > { %p1702_p5 = pnand %p1700_p1, %p1660_p2  ;;  %p1708_p6 = scmp.lt.s32.totalorder %s1706_s14, %s1699_s0 }
  0x6a   : > { %p1703_p0 = pneg %p1702_p5  ;;  %p1709_p3 = por %p1708_p6, %p1707_p7 }
  0x6c   : > { %p1710_p13 = pnand %p1709_p3, %p1703_p0 }
  0x6e   : > { %1713 = shalt.err (!%p1710_p13)
}
  0x6f   : > { %1518 = dma.hbm_to_vmem [thread:$0]  (!%p1957_p8), %s2019_s20, 128, %s276_s1, %s265_s2  }
  0x70   : > { %p2625_p4 = scmp.ne.s32.totalorder %s2617_s11, 0 }
  0x71   : > { %s2043_s30 = sand.u32 (!%p2625_p4), 1, %s1808_s22   ;;  %p2626_p13 = scmp.ne.s32.totalorder (!%p2625_p4), %s2614_s8, 0 }
  0x72   : > { %284 = sbr.rel (%p2625_p4) target bundleno = 2052 (0x804), region = 40  ;;  %s1470_s29 = sshll.u32 (!%p2625_p4), %s2043_s30, 6 }
  0x73   : > { %s287_s15 = scalar_lea.sflag (!%p2625_p4), [#allocation4], %s2043_s30  ;;  %s2049_s12 = scalar_lea.vmem (!%p2625_p4), [#allocation3], %s1470_s29 }
  0x77   : > { %1783 = dma.done.wait (%p2626_p13), %s287_s15, 1024  }
  0x78   : > { %1785 = vsyncadd (%p2626_p13), %s287_s15, 4294966272  ;;  %p2627_p8 = scmp.eq.s32.totalorder %s1888_s25, 0 }
  0x7a   : > { %1787 = dma.done.wait (%p2627_p8), [#allocation7], 8192   ;;  %p2628_p2 = pmov %p2627_p8 }
  0x7b   : > { %s1473_s1 = sshll.u32 %s2043_s30, 3  ;;  %s304_s2 = scalar_lea.sflag [#allocation10], %s2043_s30 }
  0x7c   : > { %1789 = vsyncadd (%p2628_p2), [#allocation7], 4294959104  ;;  %s2063_s11 = scalar_lea.vmem [#allocation9], %s1473_s1 }
  0x7d   : > { %1791 = dma.done.wait (%p2626_p13), %s304_s2, 128  }
  0x7e   : > { %1793 = vsyncadd (%p2626_p13), %s304_s2, 4294967168  ;;  %v1826_v0 = vmov 0.0   ;;  %v385_v1 = vld [vmem:[#allocation6 + $0xf8] sm:$0xff]  ;;  %v384_v3 = vld [vmem:[#allocation6 + $0xf0] sm:$0xff]  ;;  %s2503_s20 = scalar_lea.vmem [#allocation11], %s1470_s29  ;;  %s2515_s26 = scalar_lea.vmem [#allocation12], %s1473_s1 }
  0x7f   : > { %462 = vmatprep.mubr.f32.mxu0 %v1826_v0  ;;  %631 = vmatprep.mubr.f32.mxu1 %v1826_v0  ;;  %v2071_v2 = vld [vmem:[#allocation8 + $0xf8] sm:$0xff]  ;;  %v2074_v4 = vld [vmem:[#allocation8 + $0xf0] sm:$0xff]  ;;  %v383_v5 = vld [vmem:[#allocation6 + $0xe8] sm:$0xff]  ;;  %s1485_s7 = sshll.u32 %s1888_s25, 7  ;;  %s1309_s0 = sshll.u32 %s2515_s26, 4  ;;  %s1310_s0 = int_to_ptr.vmem [resolvable:$true] %s1309_s0 }
  0x80   : > { %398 = vmatprep.subr.mxu0 %v385_v1  ;;  %567 = vmatprep.subr.mxu1 %v2071_v2  ;;  %v2076_v6 = vld [vmem:[#allocation8 + $0xe8] sm:$0xff]  ;;  %v382_v7 = vld [vmem:[#allocation6 + $0xe0] sm:$0xff]  ;;  %v381_v9 = vld [vmem:[#allocation6 + $0xd8] sm:$0xff]  ;;  %s1307_s17 = scalar_lea.hbm %s2602_s6, %s1485_s7  ;;  %s1281_s13 = scalar_lea.sflag [#allocation13], %s2043_s30 }
  0x81   : > { %399 = vmatpush1.msra.mxu0 %v384_v3  ;;  %568 = vmatpush1.msra.mxu1 %v2074_v4  ;;  %v2079_v8 = vld [vmem:[#allocation8 + $0xe0] sm:$0xff]  ;;  %v2082_v10 = vld [vmem:[#allocation8 + $0xd8] sm:$0xff]  ;;  %v380_v11 = vld [vmem:[#allocation6 + $0xd0] sm:$0xff]  ;;  %s1714_s19 = scalar_lea.vmem %s1310_s0, 128  ;;  %p2629_p12 = scmp.ne.s32.totalorder %s2615_s9, 0 }
  0x82   : > { %400 = vmatprep.subr.mxu0 %v383_v5  ;;  %569 = vmatprep.subr.mxu1 %v2076_v6  ;;  %v2084_v12 = vld [vmem:[#allocation8 + $0xd0] sm:$0xff]  ;;  %v379_v13 = vld [vmem:[#allocation6 + $0xc8] sm:$0xff]  ;;  %v378_v15 = vld [vmem:[#allocation6 + $0xc0] sm:$0xff]  ;;  %p1715_p11 = scmp.ne.s32.totalorder %s1310_s0, %s1714_s19  ;;  %s1827_s14 = smov [#allocation12]  }
  0x83   : > { %401 = vmatpush1.msra.mxu0 %v382_v7  ;;  %570 = vmatpush1.msra.mxu1 %v2079_v8  ;;  %v2087_v14 = vld [vmem:[#allocation8 + $0xc8] sm:$0xff]  ;;  %v2090_v16 = vld [vmem:[#allocation8 + $0xc0] sm:$0xff]  ;;  %v377_v17 = vld [vmem:[#allocation6 + $0xb8] sm:$0xff]  ;;  %s1718_s29 = sshll.u32 %s1827_s14, 4  ;;  %s1719_s29 = int_to_ptr.vmem [resolvable:$false] %s1718_s29 }
  0x84   : > { %402 = vmatprep.subr.mxu0 %v381_v9  ;;  %571 = vmatprep.subr.mxu1 %v2082_v10  ;;  %v2093_v18 = vld [vmem:[#allocation8 + $0xb8] sm:$0xff]  ;;  %v376_v19 = vld [vmem:[#allocation6 + $0xb0] sm:$0xff]  ;;  %v375_v21 = vld [vmem:[#allocation6 + $0xa8] sm:$0xff]  ;;  %p1716_p9 = pnand %p1715_p11, %p2629_p12  ;;  %s1720_s15 = scalar_lea.vmem %s1719_s29, 256 }
  0x85   : > { %403 = vmatpush1.msra.mxu0 %v380_v11  ;;  %572 = vmatpush1.msra.mxu1 %v2084_v12  ;;  %v2096_v20 = vld [vmem:[#allocation8 + $0xb0] sm:$0xff]  ;;  %v2099_v22 = vld [vmem:[#allocation8 + $0xa8] sm:$0xff]  ;;  %v374_v23 = vld [vmem:[#allocation6 + $0xa0] sm:$0xff]  ;;  %p1721_p1 = scmp.lt.s32.totalorder %s1310_s0, %s1719_s29  ;;  %p1722_p5 = scmp.lt.s32.totalorder %s1720_s15, %s1714_s19 }
  0x86   : > { %404 = vmatprep.subr.mxu0 %v379_v13  ;;  %573 = vmatprep.subr.mxu1 %v2087_v14  ;;  %v2102_v24 = vld [vmem:[#allocation8 + $0xa0] sm:$0xff]  ;;  %v373_v25 = vld [vmem:[#allocation6 + $0x98] sm:$0xff]  ;;  %v372_v27 = vld [vmem:[#allocation6 + $0x90] sm:$0xff]  ;;  %p1717_p10 = pneg %p1716_p9 }
  0x87   : > { %405 = vmatpush1.msra.mxu0 %v378_v15  ;;  %574 = vmatpush1.msra.mxu1 %v2090_v16  ;;  %v2105_v26 = vld [vmem:[#allocation8 + $0x98] sm:$0xff]  ;;  %v2108_v28 = vld [vmem:[#allocation8 + $0x90] sm:$0xff]  ;;  %v371_v29 = vld [vmem:[#allocation6 + $0x88] sm:$0xff]  ;;  %p1723_p0 = por %p1722_p5, %p1721_p1 }
  0x88   : > { %406 = vmatprep.subr.mxu0 %v377_v17  ;;  %575 = vmatprep.subr.mxu1 %v2093_v18  ;;  %v2111_v30 = vld [vmem:[#allocation8 + $0x88] sm:$0xff]  ;;  %v370_v31 = vld [vmem:[#allocation6 + $0x80] sm:$0xff]  ;;  %v369_v33 = vld [vmem:[#allocation6 + $0x78] sm:$0xff] }
  0x89   : > { %407 = vmatpush1.msra.mxu0 %v376_v19  ;;  %576 = vmatpush1.msra.mxu1 %v2096_v20  ;;  %v2114_v32 = vld [vmem:[#allocation8 + $0x80] sm:$0xff]  ;;  %v2117_v34 = vld [vmem:[#allocation8 + $0x78] sm:$0xff]  ;;  %v368_v35 = vld [vmem:[#allocation6 + $0x70] sm:$0xff]  ;;  %p1724_p7 = pnand %p1723_p0, %p1717_p10 }
  0x8a   : > { %408 = vmatprep.subr.mxu0 %v375_v21  ;;  %577 = vmatprep.subr.mxu1 %v2099_v22  ;;  %v2120_v36 = vld [vmem:[#allocation8 + $0x70] sm:$0xff]  ;;  %v367_v37 = vld [vmem:[#allocation6 + $0x68] sm:$0xff]  ;;  %v366_v39 = vld [vmem:[#allocation6 + $0x60] sm:$0xff]  ;;  %v388_v21 = vlaneseq }
  0x8b   : > { %409 = vmatpush1.msra.mxu0 %v374_v23  ;;  %578 = vmatpush1.msra.mxu1 %v2102_v24  ;;  %v2123_v38 = vld [vmem:[#allocation8 + $0x68] sm:$0xff]  ;;  %v2126_v40 = vld [vmem:[#allocation8 + $0x60] sm:$0xff]  ;;  %v365_v41 = vld [vmem:[#allocation6 + $0x58] sm:$0xff] }
  0x8c   : > { %410 = vmatprep.subr.mxu0 %v373_v25  ;;  %579 = vmatprep.subr.mxu1 %v2105_v26  ;;  %v2129_v42 = vld [vmem:[#allocation8 + $0x58] sm:$0xff]  ;;  %v364_v43 = vld [vmem:[#allocation6 + $0x50] sm:$0xff]  ;;  %v363_v45 = vld [vmem:[#allocation6 + $0x48] sm:$0xff]  ;;  %v389_v23 = vshrl.u32 %v388_v21, 7 }
  0x8d   : > { %411 = vmatpush1.msra.mxu0 %v372_v27  ;;  %580 = vmatpush1.msra.mxu1 %v2108_v28  ;;  %v2132_v44 = vld [vmem:[#allocation8 + $0x50] sm:$0xff]  ;;  %v2135_v46 = vld [vmem:[#allocation8 + $0x48] sm:$0xff]  ;;  %v362_v47 = vld [vmem:[#allocation6 + $0x40] sm:$0xff] }
  0x8e   : > { %412 = vmatprep.subr.mxu0 %v371_v29  ;;  %581 = vmatprep.subr.mxu1 %v2111_v30  ;;  %v2138_v48 = vld [vmem:[#allocation8 + $0x40] sm:$0xff]  ;;  %v361_v49 = vld [vmem:[#allocation6 + $0x38] sm:$0xff]  ;;  %v360_v51 = vld [vmem:[#allocation6 + $0x30] sm:$0xff]  ;;  %v390_v25 = vsub.s32 0, %v389_v23  ;;  %v394_v29 = vsub.s32 1, %v389_v23 }
  0x8f   : > { %413 = vmatpush1.msra.mxu0 %v370_v31  ;;  %582 = vmatpush1.msra.mxu1 %v2114_v32  ;;  %v2141_v50 = vld [vmem:[#allocation8 + $0x38] sm:$0xff]  ;;  %v2144_v52 = vld [vmem:[#allocation8 + $0x30] sm:$0xff]  ;;  %v359_v53 = vld [vmem:[#allocation6 + $0x28] sm:$0xff] }
  0x90   : > { %414 = vmatprep.subr.mxu0 %v369_v33  ;;  %583 = vmatprep.subr.mxu1 %v2117_v34  ;;  %v2147_v54 = vld [vmem:[#allocation8 + $0x28] sm:$0xff]  ;;  %v358_v55 = vld [vmem:[#allocation6 + $0x20] sm:$0xff]  ;;  %v357_v57 = vld [vmem:[#allocation6 + $0x18] sm:$0xff] }
  0x91   : > { %415 = vmatpush1.msra.mxu0 %v368_v35  ;;  %584 = vmatpush1.msra.mxu1 %v2120_v36  ;;  %v2150_v56 = vld [vmem:[#allocation8 + $0x20] sm:$0xff]  ;;  %v2153_v58 = vld [vmem:[#allocation8 + $0x18] sm:$0xff]  ;;  %v356_v59 = vld [vmem:[#allocation6 + $0x10] sm:$0xff] }
  0x92   : > { %416 = vmatprep.subr.mxu0 %v367_v37  ;;  %585 = vmatprep.subr.mxu1 %v2123_v38  ;;  %v2156_v60 = vld [vmem:[#allocation8 + $0x10] sm:$0xff]  ;;  %v355_v61 = vld [vmem:[#allocation6 + $0x8] sm:$0xff]  ;;  %v354_v63 = vld [vmem:[#allocation6] sm:$0xff] }
  0x93   : > { %417 = vmatpush1.msra.mxu0 %v366_v39  ;;  %586 = vmatpush1.msra.mxu1 %v2126_v40  ;;  %v2159_v62 = vld [vmem:[#allocation8 + $0x8] sm:$0xff]  ;;  %v2162_v1 = vld [vmem:[#allocation8] sm:$0xff]  ;;  %v348_v9 = vld [vmem:[%s2049_s12 + $0x10] sm:$0xff]  ;;  %v2258_v39 = vand.u32 127, %v388_v21 }
  0x94   : > { %418 = vmatprep.subr.mxu0 %v365_v41  ;;  %587 = vmatprep.subr.mxu1 %v2129_v42  ;;  %v346_v3 = vld [vmem:[%s2049_s12] sm:$0xff]  ;;  %v347_v7 = vld [vmem:[%s2049_s12 + $0x8] sm:$0xff]  ;;  %v349_v11 = vld [vmem:[%s2049_s12 + $0x18] sm:$0xff] }
  0x95   : > { %419 = vmatpush1.msra.mxu0 %v364_v43  ;;  %588 = vmatpush1.msra.mxu1 %v2132_v44  ;;  %v561_v5 = vld [vmem:[%s2063_s11] sm:$0xff]  ;;  %v352_v17 = vld [vmem:[%s2049_s12 + $0x30] sm:$0xff]  ;;  %v353_v19 = vld [vmem:[%s2049_s12 + $0x38] sm:$0xff]  ;;  %vm638_vm0 = vcmp.lt.s32.totalorder %v2258_v39, 18 }
  0x96   : > { %420 = vmatprep.subr.mxu0 %v363_v45  ;;  %589 = vmatprep.subr.mxu1 %v2135_v46  ;;  %v350_v13 = vld [vmem:[%s2049_s12 + $0x20] sm:$0xff]  ;;  %v351_v15 = vld [vmem:[%s2049_s12 + $0x28] sm:$0xff] }
  0x97   : > { %421 = vmatpush1.msra.mxu0 %v362_v47  ;;  %590 = vmatpush1.msra.mxu1 %v2138_v48  ;;  %v386_v27 = vld [vmem:[%s2599_s3] sm:$0x3] }
  0x98   : > { %422 = vmatprep.subr.mxu0 %v361_v49  ;;  %591 = vmatprep.subr.mxu1 %v2141_v50  ;;  %v2254_v31 = vrot.slane %v386_v27, %v390_v25  ;;  %v2256_v33 = vrot.slane %v386_v27, %v394_v29 }
  0x99   : > { %423 = vmatpush1.msra.mxu0 %v360_v51  ;;  %592 = vmatpush1.msra.mxu1 %v2144_v52 }
  0x9a   : > { %424 = vmatprep.subr.mxu0 %v359_v53  ;;  %593 = vmatprep.subr.mxu1 %v2147_v54 }
  0x9b   : > { %425 = vmatpush1.msra.mxu0 %v358_v55  ;;  %594 = vmatpush1.msra.mxu1 %v2150_v56 }
  0x9c   : > { %426 = vmatprep.subr.mxu0 %v357_v57  ;;  %595 = vmatprep.subr.mxu1 %v2153_v58 }
  0x9d   : > { %427 = vmatpush1.msra.mxu0 %v356_v59  ;;  %596 = vmatpush1.msra.mxu1 %v2156_v60 }
  0x9e   : > { %428 = vmatprep.subr.mxu0 %v355_v61  ;;  %597 = vmatprep.subr.mxu1 %v2159_v62 }
  0x9f   : > { %429 = vmatpush1.msra.mxu0 %v354_v63  ;;  %598 = vmatpush1.msra.mxu1 %v2162_v1 }
  0xa0   : > { %463 = vmatmul.mubr.f32.vlgmr.msra.gmra.mxu0 %v346_v3  ;;  %632 = vmatmul.mubr.f32.vlgmr.msra.gmra.mxu1 %v561_v5 }
  0xa1   : > { %656 = vmatprep.subr.mxu0 %v2071_v2  ;;  %468 = vmatprep.mubr.f32.mxu0 %v1826_v0 }
  0xa2   : > { %657 = vmatpush1.msra.mxu0 %v2074_v4  ;;  %745 = vmatprep.subr.mxu1 %v2071_v2 }
  0xa3   : > { %658 = vmatprep.subr.mxu0 %v2076_v6  ;;  %746 = vmatpush1.msra.mxu1 %v2074_v4 }
  0xa4   : > { %469 = vmatmul.mubr.f32.gmra.mxu0 %v347_v7  ;;  %747 = vmatprep.subr.mxu1 %v2076_v6 }
  0xa5   : > { %659 = vmatpush1.msra.mxu0 %v2079_v8  ;;  %474 = vmatprep.mubr.f32.mxu0 %v1826_v0 }
  0xa6   : > { %660 = vmatprep.subr.mxu0 %v2082_v10  ;;  %748 = vmatpush1.msra.mxu1 %v2079_v8 }
  0xa7   : > { %661 = vmatpush1.msra.mxu0 %v2084_v12  ;;  %749 = vmatprep.subr.mxu1 %v2082_v10 }
  0xa8   : > { %662 = vmatprep.subr.mxu0 %v2087_v14  ;;  %475 = vmatmul.mubr.f32.gmra.mxu0 %v348_v9 }
  0xa9   : > { %663 = vmatpush1.msra.mxu0 %v2090_v16  ;;  %480 = vmatprep.mubr.f32.mxu0 %v1826_v0 }
  0xaa   : > { %664 = vmatprep.subr.mxu0 %v2093_v18  ;;  %750 = vmatpush1.msra.mxu1 %v2084_v12 }
  0xab   : > { %665 = vmatpush1.msra.mxu0 %v2096_v20  ;;  %751 = vmatprep.subr.mxu1 %v2087_v14 }
  0xac   : > { %666 = vmatprep.subr.mxu0 %v2099_v22  ;;  %481 = vmatmul.mubr.f32.gmra.mxu0 %v349_v11 }
  0xad   : > { %667 = vmatpush1.msra.mxu0 %v2102_v24  ;;  %486 = vmatprep.mubr.f32.mxu0 %v1826_v0 }
  0xae   : > { %668 = vmatprep.subr.mxu0 %v2105_v26  ;;  %752 = vmatpush1.msra.mxu1 %v2090_v16 }
  0xaf   : > { %669 = vmatpush1.msra.mxu0 %v2108_v28  ;;  %753 = vmatprep.subr.mxu1 %v2093_v18 }
  0xb0   : > { %670 = vmatprep.subr.mxu0 %v2111_v30  ;;  %487 = vmatmul.mubr.f32.gmra.mxu0 %v350_v13 }
  0xb1   : > { %671 = vmatpush1.msra.mxu0 %v2114_v32  ;;  %492 = vmatprep.mubr.f32.mxu0 %v1826_v0 }
  0xb2   : > { %672 = vmatprep.subr.mxu0 %v2117_v34  ;;  %754 = vmatpush1.msra.mxu1 %v2096_v20 }
  0xb3   : > { %673 = vmatpush1.msra.mxu0 %v2120_v36  ;;  %755 = vmatprep.subr.mxu1 %v2099_v22 }
  0xb4   : > { %674 = vmatprep.subr.mxu0 %v2123_v38  ;;  %493 = vmatmul.mubr.f32.gmra.mxu0 %v351_v15 }
  0xb5   : > { %675 = vmatpush1.msra.mxu0 %v2126_v40  ;;  %498 = vmatprep.mubr.f32.mxu0 %v1826_v0 }
  0xb6   : > { %676 = vmatprep.subr.mxu0 %v2129_v42  ;;  %756 = vmatpush1.msra.mxu1 %v2102_v24 }
  0xb7   : > { %677 = vmatpush1.msra.mxu0 %v2132_v44  ;;  %757 = vmatprep.subr.mxu1 %v2105_v26 }
  0xb8   : > { %678 = vmatprep.subr.mxu0 %v2135_v46  ;;  %499 = vmatmul.mubr.f32.gmra.mxu0 %v352_v17 }
  0xb9   : > { %679 = vmatpush1.msra.mxu0 %v2138_v48  ;;  %504 = vmatprep.mubr.f32.mxu0 %v1826_v0 }
  0xba   : > { %680 = vmatprep.subr.mxu0 %v2141_v50  ;;  %758 = vmatpush1.msra.mxu1 %v2108_v28 }
  0xbb   : > { %681 = vmatpush1.msra.mxu0 %v2144_v52  ;;  %759 = vmatprep.subr.mxu1 %v2111_v30 }
  0xbc   : > { %682 = vmatprep.subr.mxu0 %v2147_v54  ;;  %505 = vmatmul.mubr.f32.gmra.mxu0 %v353_v19 }
  0xbd   : > { %683 = vmatpush1.msra.mxu0 %v2150_v56  ;;  %720 = vmatprep.mubr.f32.mxu0 %v1826_v0 }
  0xbe   : > { %684 = vmatprep.subr.mxu0 %v2153_v58  ;;  %760 = vmatpush1.msra.mxu1 %v2114_v32 }
  0xbf   : > { %685 = vmatpush1.msra.mxu0 %v2156_v60  ;;  %761 = vmatprep.subr.mxu1 %v2117_v34 }
  0xc0   : > { %686 = vmatprep.subr.mxu0 %v2159_v62  ;;  %762 = vmatpush1.msra.mxu1 %v2120_v36 }
  0xc1   : > { %687 = vmatpush1.msra.mxu0 %v2162_v1  ;;  %763 = vmatprep.subr.mxu1 %v2123_v38 }
  0xc2   : > { %764 = vmatpush1.msra.mxu1 %v2126_v40  ;;  %809 = vmatprep.mubr.f32.mxu1 %v1826_v0 }
  0xc3   : > { %765 = vmatprep.subr.mxu1 %v2129_v42  ;;  %834 = vmatprep.subr.mxu0 %v2071_v2 }
  0xc4   : > { %766 = vmatpush1.msra.mxu1 %v2132_v44 }
  0xc5   : > { %767 = vmatprep.subr.mxu1 %v2135_v46 }
  0xc6   : > { %768 = vmatpush1.msra.mxu1 %v2138_v48 }
  0xc7   : > { %769 = vmatprep.subr.mxu1 %v2141_v50 }
  0xc8   : > { %770 = vmatpush1.msra.mxu1 %v2144_v52 }
  0xc9   : > { %771 = vmatprep.subr.mxu1 %v2147_v54 }
  0xca   : > { %772 = vmatpush1.msra.mxu1 %v2150_v56 }
  0xcb   : > { %773 = vmatprep.subr.mxu1 %v2153_v58 }
  0xcc   : > { %774 = vmatpush1.msra.mxu1 %v2156_v60 }
  0xcd   : > { %775 = vmatprep.subr.mxu1 %v2159_v62 }
  0xce   : > { %776 = vmatpush1.msra.mxu1 %v2162_v1 }
  0xcf   : > { %923 = vmatprep.subr.mxu1 %v2071_v2 }
 0x160   : > { %v464_v35 = vpop.f32.mrf.mxu0  ;;  %v633_v37 = vpop.f32.mrf.mxu1 }
 0x161   : > { %v465_v41 = vadd.f32 %v464_v35, %v2254_v31 }
 0x162   : > { %v466_v43 = vpop.f32.mrf.mxu0  ;;  %v635_v49 = vpop.f32.mrf.mxu1 }
 0x163   : > { %v634_v45 = vadd.f32 %v633_v37, %v465_v41  ;;  %v467_v47 = vadd.f32 %v466_v43, %v2256_v33 }
 0x164   : > { %v470_v55 = vpop.f32.mrf.mxu0 }
 0x165   : > { %v636_v51 = vadd.f32 %v635_v49, %v467_v47  ;;  %721 = vmatmul.mubr.f32.vlgmr.msra.gmra.mxu0 %v634_v45  ;;  %v471_v49 = vadd.f32 %v470_v55, %v2254_v31 }
 0x166   : > { %835 = vmatpush1.msra.mxu0 %v2074_v4  ;;  %898 = vmatprep.mubr.f32.mxu0 %v1826_v0  ;;  %v472_v57 = vpop.f32.mrf.mxu0 }
 0x167   : > { %v2267_v53 = vsel %vm638_vm0, %v636_v51, -1e+30  ;;  %836 = vmatprep.subr.mxu0 %v2076_v6 }
 0x168   : > { %640 = vmax.xlane.f32.xlu0 %v2267_v53  ;;  %837 = vmatpush1.msra.mxu0 %v2079_v8  ;;  %v476_v59 = vpop.f32.mrf.mxu0 }
 0x169   : > { %838 = vmatprep.subr.mxu0 %v2082_v10  ;;  %v2291_v61 = vadd.f32 %v476_v59, %v2254_v31  ;;  %v473_v59 = vadd.f32 %v472_v57, %v2256_v33 }
 0x16a   : > { %839 = vmatpush1.msra.mxu0 %v2084_v12  ;;  %v478_v63 = vpop.f32.mrf.mxu0 }
 0x16b   : > { %840 = vmatprep.subr.mxu0 %v2087_v14  ;;  %v2296_v3 = vadd.f32 %v478_v63, %v2256_v33 }
 0x16c   : > { %841 = vmatpush1.msra.mxu0 %v2090_v16  ;;  %v482_v5 = vpop.f32.mrf.mxu0 }
 0x16d   : > { %842 = vmatprep.subr.mxu0 %v2093_v18  ;;  %v2301_v7 = vadd.f32 %v482_v5, %v2254_v31 }
 0x16e   : > { %843 = vmatpush1.msra.mxu0 %v2096_v20  ;;  %v484_v9 = vpop.f32.mrf.mxu0 }
 0x16f   : > { %844 = vmatprep.subr.mxu0 %v2099_v22  ;;  %v2306_v11 = vadd.f32 %v484_v9, %v2256_v33 }
 0x170   : > { %845 = vmatpush1.msra.mxu0 %v2102_v24  ;;  %v488_v13 = vpop.f32.mrf.mxu0 }
 0x171   : > { %846 = vmatprep.subr.mxu0 %v2105_v26  ;;  %v2311_v15 = vadd.f32 %v488_v13, %v2254_v31 }
 0x172   : > { %847 = vmatpush1.msra.mxu0 %v2108_v28  ;;  %v490_v17 = vpop.f32.mrf.mxu0 }
 0x173   : > { %848 = vmatprep.subr.mxu0 %v2111_v30  ;;  %v2316_v19 = vadd.f32 %v490_v17, %v2256_v33 }
 0x174   : > { %849 = vmatpush1.msra.mxu0 %v2114_v32  ;;  %v494_v21 = vpop.f32.mrf.mxu0 }
 0x175   : > { %850 = vmatprep.subr.mxu0 %v2117_v34  ;;  %v2320_v23 = vadd.f32 %v494_v21, %v2254_v31 }
 0x176   : > { %851 = vmatpush1.msra.mxu0 %v2120_v36  ;;  %v496_v25 = vpop.f32.mrf.mxu0 }
 0x177   : > { %852 = vmatprep.subr.mxu0 %v2123_v38  ;;  %v2323_v27 = vadd.f32 %v496_v25, %v2256_v33 }
 0x178   : > { %853 = vmatpush1.msra.mxu0 %v2126_v40  ;;  %v500_v29 = vpop.f32.mrf.mxu0 }
 0x179   : > { %854 = vmatprep.subr.mxu0 %v2129_v42  ;;  %v2326_v35 = vadd.f32 %v500_v29, %v2254_v31 }
 0x17a   : > { %855 = vmatpush1.msra.mxu0 %v2132_v44  ;;  %v502_v37 = vpop.f32.mrf.mxu0 }
 0x17b   : > { %856 = vmatprep.subr.mxu0 %v2135_v46  ;;  %v2329_v41 = vadd.f32 %v502_v37, %v2256_v33 }
 0x17c   : > { %857 = vmatpush1.msra.mxu0 %v2138_v48  ;;  %v506_v43 = vpop.f32.mrf.mxu0 }
 0x17d   : > { %858 = vmatprep.subr.mxu0 %v2141_v50  ;;  %v2332_v45 = vadd.f32 %v506_v43, %v2254_v31 }
 0x17e   : > { %859 = vmatpush1.msra.mxu0 %v2144_v52  ;;  %v2334_v47 = vpop.f32.mrf.mxu0 }
 0x17f   : > { %860 = vmatprep.subr.mxu0 %v2147_v54 }
 0x180   : > { %861 = vmatpush1.msra.mxu0 %v2150_v56 }
 0x181   : > { %862 = vmatprep.subr.mxu0 %v2153_v58 }
 0x182   : > { %863 = vmatpush1.msra.mxu0 %v2156_v60 }
 0x183   : > { %864 = vmatprep.subr.mxu0 %v2159_v62 }
 0x184   : > { %865 = vmatpush1.msra.mxu0 %v2162_v1 }
 0x185   : > { %1012 = vmatprep.subr.mxu0 %v2071_v2 }
 0x225   : > { %v722_v51 = vpop.f32.mrf.mxu0 }
 0x226   : > { %v723_v63 = vadd.f32 %v722_v51, %v471_v49 }
 0x227   : > { %v724_v5 = vpop.f32.mrf.mxu0 }
 0x228   : > { %v725_v9 = vadd.f32 %v724_v5, %v473_v59  ;;  %810 = vmatmul.mubr.f32.vlgmr.msra.gmra.mxu1 %v723_v63 }
 0x229   : > { %924 = vmatpush1.msra.mxu1 %v2074_v4  ;;  %987 = vmatprep.mubr.f32.mxu1 %v1826_v0 }
 0x22a   : > { %v2342_v13 = vsel %vm638_vm0, %v725_v9, -1e+30  ;;  %925 = vmatprep.subr.mxu1 %v2076_v6 }
 0x22b   : > { %728 = vmax.xlane.f32.xlu0 %v2342_v13  ;;  %926 = vmatpush1.msra.mxu1 %v2079_v8 }
 0x22c   : > { %927 = vmatprep.subr.mxu1 %v2082_v10 }
 0x22d   : > { %928 = vmatpush1.msra.mxu1 %v2084_v12 }
 0x22e   : > { %929 = vmatprep.subr.mxu1 %v2087_v14 }
 0x22f   : > { %930 = vmatpush1.msra.mxu1 %v2090_v16 }
 0x230   : > { %931 = vmatprep.subr.mxu1 %v2093_v18 }
 0x231   : > { %932 = vmatpush1.msra.mxu1 %v2096_v20 }
 0x232   : > { %933 = vmatprep.subr.mxu1 %v2099_v22 }
 0x233   : > { %934 = vmatpush1.msra.mxu1 %v2102_v24 }
 0x234   : > { %935 = vmatprep.subr.mxu1 %v2105_v26 }
 0x235   : > { %936 = vmatpush1.msra.mxu1 %v2108_v28 }
 0x236   : > { %937 = vmatprep.subr.mxu1 %v2111_v30 }
 0x237   : > { %938 = vmatpush1.msra.mxu1 %v2114_v32 }
 0x238   : > { %939 = vmatprep.subr.mxu1 %v2117_v34 }
 0x239   : > { %940 = vmatpush1.msra.mxu1 %v2120_v36 }
 0x23a   : > { %941 = vmatprep.subr.mxu1 %v2123_v38 }
 0x23b   : > { %942 = vmatpush1.msra.mxu1 %v2126_v40 }
 0x23c   : > { %943 = vmatprep.subr.mxu1 %v2129_v42 }
 0x23d   : > { %944 = vmatpush1.msra.mxu1 %v2132_v44 }
 0x23e   : > { %945 = vmatprep.subr.mxu1 %v2135_v46 }
 0x23f   : > { %946 = vmatpush1.msra.mxu1 %v2138_v48 }
 0x240   : > { %947 = vmatprep.subr.mxu1 %v2141_v50 }
 0x241   : > { %948 = vmatpush1.msra.mxu1 %v2144_v52 }
 0x242   : > { %949 = vmatprep.subr.mxu1 %v2147_v54 }
 0x243   : > { %950 = vmatpush1.msra.mxu1 %v2150_v56 }
 0x244   : > { %951 = vmatprep.subr.mxu1 %v2153_v58 }
 0x245   : > { %952 = vmatpush1.msra.mxu1 %v2156_v60 }
 0x246   : > { %953 = vmatprep.subr.mxu1 %v2159_v62 }
 0x247   : > { %954 = vmatpush1.msra.mxu1 %v2162_v1 }
 0x248   : > { %1101 = vmatprep.subr.mxu1 %v2071_v2 }
 0x2e8   : > { %v811_v31 = vpop.f32.mrf.mxu1 }
 0x2e9   : > { %v812_v55 = vadd.f32 %v811_v31, %v2291_v61 }
 0x2ea   : > { %v813_v57 = vpop.f32.mrf.mxu1 }
 0x2eb   : > { %v814_v17 = vadd.f32 %v813_v57, %v2296_v3  ;;  %899 = vmatmul.mubr.f32.vlgmr.msra.gmra.mxu0 %v812_v55 }
 0x2ec   : > { %1013 = vmatpush1.msra.mxu0 %v2074_v4  ;;  %1076 = vmatprep.mubr.f32.mxu0 %v1826_v0 }
 0x2ed   : > { %v2382_v21 = vsel %vm638_vm0, %v814_v17, -1e+30  ;;  %1014 = vmatprep.subr.mxu0 %v2076_v6 }
 0x2ee   : > { %817 = vmax.xlane.f32.xlu1 %v2382_v21  ;;  %1015 = vmatpush1.msra.mxu0 %v2079_v8 }
 0x2ef   : > { %1016 = vmatprep.subr.mxu0 %v2082_v10 }
 0x2f0   : > { %1017 = vmatpush1.msra.mxu0 %v2084_v12 }
 0x2f1   : > { %1018 = vmatprep.subr.mxu0 %v2087_v14 }
 0x2f2   : > { %1019 = vmatpush1.msra.mxu0 %v2090_v16 }
 0x2f3   : > { %1020 = vmatprep.subr.mxu0 %v2093_v18 }
 0x2f4   : > { %1021 = vmatpush1.msra.mxu0 %v2096_v20 }
 0x2f5   : > { %1022 = vmatprep.subr.mxu0 %v2099_v22 }
 0x2f6   : > { %1023 = vmatpush1.msra.mxu0 %v2102_v24 }
 0x2f7   : > { %1024 = vmatprep.subr.mxu0 %v2105_v26 }
 0x2f8   : > { %1025 = vmatpush1.msra.mxu0 %v2108_v28 }
 0x2f9   : > { %1026 = vmatprep.subr.mxu0 %v2111_v30 }
 0x2fa   : > { %1027 = vmatpush1.msra.mxu0 %v2114_v32 }
 0x2fb   : > { %1028 = vmatprep.subr.mxu0 %v2117_v34 }
 0x2fc   : > { %1029 = vmatpush1.msra.mxu0 %v2120_v36 }
 0x2fd   : > { %1030 = vmatprep.subr.mxu0 %v2123_v38 }
 0x2fe   : > { %1031 = vmatpush1.msra.mxu0 %v2126_v40 }
 0x2ff   : > { %1032 = vmatprep.subr.mxu0 %v2129_v42 }
 0x300   : > { %1033 = vmatpush1.msra.mxu0 %v2132_v44 }
 0x301   : > { %1034 = vmatprep.subr.mxu0 %v2135_v46 }
 0x302   : > { %1035 = vmatpush1.msra.mxu0 %v2138_v48 }
 0x303   : > { %1036 = vmatprep.subr.mxu0 %v2141_v50 }
 0x304   : > { %1037 = vmatpush1.msra.mxu0 %v2144_v52 }
 0x305   : > { %1038 = vmatprep.subr.mxu0 %v2147_v54 }
 0x306   : > { %1039 = vmatpush1.msra.mxu0 %v2150_v56 }
 0x307   : > { %1040 = vmatprep.subr.mxu0 %v2153_v58 }
 0x308   : > { %1041 = vmatpush1.msra.mxu0 %v2156_v60 }
 0x309   : > { %1042 = vmatprep.subr.mxu0 %v2159_v62 }
 0x30a   : > { %1043 = vmatpush1.msra.mxu0 %v2162_v1 }
 0x30b   : > { %1190 = vmatprep.subr.mxu0 %v2071_v2 }
 0x3ab   : > { %v900_v61 = vpop.f32.mrf.mxu0 }
 0x3ac   : > { %v901_v3 = vadd.f32 %v900_v61, %v2301_v7 }
 0x3ad   : > { %v902_v25 = vpop.f32.mrf.mxu0 }
 0x3ae   : > { %v903_v29 = vadd.f32 %v902_v25, %v2306_v11  ;;  %988 = vmatmul.mubr.f32.vlgmr.msra.gmra.mxu1 %v901_v3 }
 0x3af   : > { %1102 = vmatpush1.msra.mxu1 %v2074_v4  ;;  %1165 = vmatprep.mubr.f32.mxu1 %v1826_v0 }
 0x3b0   : > { %v2422_v37 = vsel %vm638_vm0, %v903_v29, -1e+30  ;;  %1103 = vmatprep.subr.mxu1 %v2076_v6 }
 0x3b1   : > { %906 = vmax.xlane.f32.xlu1 %v2422_v37  ;;  %1104 = vmatpush1.msra.mxu1 %v2079_v8 }
 0x3b2   : > { %1105 = vmatprep.subr.mxu1 %v2082_v10 }
 0x3b3   : > { %1106 = vmatpush1.msra.mxu1 %v2084_v12 }
 0x3b4   : > { %1107 = vmatprep.subr.mxu1 %v2087_v14 }
 0x3b5   : > { %1108 = vmatpush1.msra.mxu1 %v2090_v16 }
 0x3b6   : > { %1109 = vmatprep.subr.mxu1 %v2093_v18 }
 0x3b7   : > { %1110 = vmatpush1.msra.mxu1 %v2096_v20 }
 0x3b8   : > { %1111 = vmatprep.subr.mxu1 %v2099_v22 }
 0x3b9   : > { %1112 = vmatpush1.msra.mxu1 %v2102_v24 }
 0x3ba   : > { %1113 = vmatprep.subr.mxu1 %v2105_v26 }
 0x3bb   : > { %1114 = vmatpush1.msra.mxu1 %v2108_v28 }
 0x3bc   : > { %1115 = vmatprep.subr.mxu1 %v2111_v30 }
 0x3bd   : > { %1116 = vmatpush1.msra.mxu1 %v2114_v32 }
 0x3be   : > { %1117 = vmatprep.subr.mxu1 %v2117_v34 }
 0x3bf   : > { %1118 = vmatpush1.msra.mxu1 %v2120_v36 }
 0x3c0   : > { %1119 = vmatprep.subr.mxu1 %v2123_v38 }
 0x3c1   : > { %1120 = vmatpush1.msra.mxu1 %v2126_v40 }
 0x3c2   : > { %1121 = vmatprep.subr.mxu1 %v2129_v42 }
 0x3c3   : > { %1122 = vmatpush1.msra.mxu1 %v2132_v44 }
 0x3c4   : > { %1123 = vmatprep.subr.mxu1 %v2135_v46 }
 0x3c5   : > { %1124 = vmatpush1.msra.mxu1 %v2138_v48 }
 0x3c6   : > { %1125 = vmatprep.subr.mxu1 %v2141_v50 }
 0x3c7   : > { %1126 = vmatpush1.msra.mxu1 %v2144_v52 }
 0x3c8   : > { %1127 = vmatprep.subr.mxu1 %v2147_v54 }
 0x3c9   : > { %1128 = vmatpush1.msra.mxu1 %v2150_v56 }
 0x3ca   : > { %1129 = vmatprep.subr.mxu1 %v2153_v58 }
 0x3cb   : > { %1130 = vmatpush1.msra.mxu1 %v2156_v60 }
 0x3cc   : > { %1131 = vmatprep.subr.mxu1 %v2159_v62 }
 0x3cd   : > { %1132 = vmatpush1.msra.mxu1 %v2162_v1 }
 0x46e   : > { %v989_v2 = vpop.f32.mrf.mxu1 }
 0x46f   : > { %v990_v7 = vadd.f32 %v989_v2, %v2311_v15 }
 0x470   : > { %v991_v11 = vpop.f32.mrf.mxu1 }
 0x471   : > { %v992_v43 = vadd.f32 %v991_v11, %v2316_v19  ;;  %1077 = vmatmul.mubr.f32.vlgmr.msra.gmra.mxu0 %v990_v7 }
 0x472   : > { %1191 = vmatpush1.msra.mxu0 %v2074_v4  ;;  %1254 = vmatprep.mubr.f32.mxu0 %v1826_v0 }
 0x473   : > { %v994_v49 = vsel %vm638_vm0, %v992_v43, -1e+30  ;;  %1192 = vmatprep.subr.mxu0 %v2076_v6 }
 0x474   : > { %995 = vmax.xlane.f32.xlu0 %v994_v49  ;;  %1193 = vmatpush1.msra.mxu0 %v2079_v8 }
 0x475   : > { %1194 = vmatprep.subr.mxu0 %v2082_v10 }
 0x476   : > { %1195 = vmatpush1.msra.mxu0 %v2084_v12  ;;  %v641_v12 = vpop.xlane.xlu0 %640 }
 0x477   : > { %1196 = vmatprep.subr.mxu0 %v2087_v14  ;;  %v642_v14 = vsub.f32 %v2267_v53, %v641_v12 }
 0x478   : > { %1197 = vmatpush1.msra.mxu0 %v2090_v16 }
 0x479   : > { %1198 = vmatprep.subr.mxu0 %v2093_v18  ;;  %v818_v18 = vpop.xlane.xlu1 %817 }
 0x47a   : > { %1199 = vmatpush1.msra.mxu0 %v2096_v20  ;;  %v729_v16 = vpop.xlane.xlu0 %728  ;;  %v643_v20 = vmul.f32 1.442695, %v642_v14 }
 0x47b   : > { %1200 = vmatprep.subr.mxu0 %v2099_v22  ;;  %v819_v22 = vsub.f32 %v2382_v21, %v818_v18  ;;  %v730_v51 = vsub.f32 %v2342_v13, %v729_v16  ;;  %v509_v21 = vadd.f32 %v2334_v47, %v2256_v33 }
 0x47c   : > { %1201 = vmatpush1.msra.mxu0 %v2102_v24  ;;  %1574 = vpow2.f32 %v643_v20 }
 0x47d   : > { %1202 = vmatprep.subr.mxu0 %v2105_v26  ;;  %v820_v26 = vmul.f32 1.442695, %v819_v22  ;;  %v907_v59 = vpop.xlane.xlu1 %906  ;;  %v731_v63 = vmul.f32 1.442695, %v730_v51 }
 0x47e   : > { %1203 = vmatpush1.msra.mxu0 %v2108_v28  ;;  %v908_v5 = vsub.f32 %v2422_v37, %v907_v59 }
 0x47f   : > { %1204 = vmatprep.subr.mxu0 %v2111_v30  ;;  %1576 = vpow2.f32 %v820_v26 }
 0x480   : > { %1205 = vmatpush1.msra.mxu0 %v2114_v32  ;;  %v909_v31 = vmul.f32 1.442695, %v908_v5 }
 0x481   : > { %1206 = vmatprep.subr.mxu0 %v2117_v34 }
 0x482   : > { %1207 = vmatpush1.msra.mxu0 %v2120_v36 }
 0x483   : > { %1208 = vmatprep.subr.mxu0 %v2123_v38 }
 0x484   : > { %1209 = vmatpush1.msra.mxu0 %v2126_v40 }
 0x485   : > { %1210 = vmatprep.subr.mxu0 %v2129_v42 }
 0x486   : > { %1211 = vmatpush1.msra.mxu0 %v2132_v44 }
 0x487   : > { %1212 = vmatprep.subr.mxu0 %v2135_v46 }
 0x488   : > { %1213 = vmatpush1.msra.mxu0 %v2138_v48 }
 0x489   : > { %1214 = vmatprep.subr.mxu0 %v2141_v50  ;;  %v1575_v42 = vpop.eup %1574 }
 0x48a   : > { %1215 = vmatpush1.msra.mxu0 %v2144_v52 }
 0x48b   : > { %1216 = vmatprep.subr.mxu0 %v2147_v54 }
 0x48c   : > { %1217 = vmatpush1.msra.mxu0 %v2150_v56  ;;  %v1577_v44 = vpop.eup %1576 }
 0x48d   : > { %1218 = vmatprep.subr.mxu0 %v2153_v58 }
 0x48e   : > { %1219 = vmatpush1.msra.mxu0 %v2156_v60 }
 0x48f   : > { %1220 = vmatprep.subr.mxu0 %v2159_v62 }
 0x490   : > { %1221 = vmatpush1.msra.mxu0 %v2162_v1 }
 0x4fd   : > { %v996_v24 = vpop.xlane.xlu0 %995 }
 0x4fe   : > { %v997_v28 = vsub.f32 %v994_v49, %v996_v24 }
 0x500   : > { %v998_v30 = vmul.f32 1.442695, %v997_v28 }
 0x502   : > { %1578 = vpow2.f32 %v998_v30 }
 0x50f   : > { %v1579_v46 = vpop.eup %1578 }
 0x531   : > { %v1078_v0 = vpop.f32.mrf.mxu0 }
 0x532   : > { %v1079_v4 = vadd.f32 %v1078_v0, %v2320_v23 }
 0x533   : > { %v1080_v6 = vpop.f32.mrf.mxu0 }
 0x534   : > { %v1081_v8 = vadd.f32 %v1080_v6, %v2323_v27  ;;  %1166 = vmatmul.mubr.f32.vlgmr.msra.gmra.mxu1 %v1079_v4 }
 0x536   : > { %v1083_v10 = vsel %vm638_vm0, %v1081_v8, -1e+30 }
 0x537   : > { %1084 = vmax.xlane.f32.xlu1 %v1083_v10 }
 0x5c0   : > { %v1085_v9 = vpop.xlane.xlu1 %1084 }
 0x5c1   : > { %v1086_v55 = vsub.f32 %v1083_v10, %v1085_v9 }
 0x5c3   : > { %v1087_v57 = vmul.f32 1.442695, %v1086_v55 }
 0x5f4   : > { %v1167_v32 = vpop.f32.mrf.mxu1 }
 0x5f5   : > { %v1168_v34 = vadd.f32 %v1167_v32, %v2326_v35 }
 0x5f6   : > { %v1169_v36 = vpop.f32.mrf.mxu1 }
 0x5f7   : > { %v1170_v38 = vadd.f32 %v1169_v36, %v2329_v41  ;;  %1255 = vmatmul.mubr.f32.vlgmr.msra.gmra.mxu0 %v1168_v34 }
 0x5f9   : > { %v1172_v40 = vsel %vm638_vm0, %v1170_v38, -1e+30 }
 0x5fa   : > { %1173 = vmax.xlane.f32.xlu0 %v1172_v40 }
 0x5fe   : > { %645 = vadd.xlane.f32.xlu0 %v1575_v42 }
 0x602   : > { %822 = vadd.xlane.f32.xlu0 %v1577_v44 }
 0x606   : > { %1000 = vadd.xlane.f32.xlu0 %v1579_v46 }
 0x683   : > { %v1174_v48 = vpop.xlane.xlu0 %1173 }
 0x684   : > { %v1175_v50 = vsub.f32 %v1172_v40, %v1174_v48 }
 0x686   : > { %v1176_v52 = vmul.f32 1.442695, %v1175_v50 }
 0x687   : > { %v646_v54 = vpop.xlane.xlu0 %645 }
 0x688   : > { %1580 = vpow2.f32 %v1176_v52 }
 0x689   : > { %1582 = vlog2.f32 %v646_v54 }
 0x68b   : > { %v823_v56 = vpop.xlane.xlu0 %822 }
 0x68c   : > { %1584 = vlog2.f32 %v823_v56 }
 0x68f   : > { %v1001_v58 = vpop.xlane.xlu0 %1000 }
 0x690   : > { %1586 = vlog2.f32 %v1001_v58 }
 0x691   : > { %1588 = vpow2.f32 %v731_v63 }
 0x692   : > { %1590 = vpow2.f32 %v909_v31 }
 0x693   : > { %1592 = vpow2.f32 %v1087_v57 }
 0x695   : > { %v1581_v60 = vpop.eup %1580 }
 0x696   : > { %v1583_v62 = vpop.eup %1582  ;;  %1178 = vadd.xlane.f32.xlu0 %v1581_v60 }
 0x697   : > { %v648_v1 = vmul.f32 0.6931472, %v1583_v62 }
 0x699   : > { %v1585_v53 = vpop.eup %1584  ;;  %v649_v15 = vsub.f32 %v642_v14, %v648_v1 }
 0x69a   : > { %v825_v19 = vmul.f32 0.6931472, %v1585_v53 }
 0x69b   : > { %650 = vst [vmem:[%s2503_s20] sm:$0xff] %v649_v15 }
 0x69c   : > { %v826_v23 = vsub.f32 %v819_v22, %v825_v19 }
 0x69d   : > { %v1587_v27 = vpop.eup %1586 }
 0x69e   : > { %1477 = vst [vmem:[%s2503_s20 + $0x10] sm:$0xff] %v826_v23  ;;  %v1003_v35 = vmul.f32 0.6931472, %v1587_v27  ;;  %v1589_v29 = vpop.eup %1588 }
 0x69f   : > { %v1591_v37 = vpop.eup %1590 }
 0x6a0   : > { %v1004_v41 = vsub.f32 %v997_v28, %v1003_v35  ;;  %v1593_v33 = vpop.eup %1592 }
 0x6a2   : > { %1479 = vst [vmem:[%s2503_s20 + $0x20] sm:$0xff] %v1004_v41 }
 0x6b7   : > { %v1256_v17 = vpop.f32.mrf.mxu0 }
 0x6b8   : > { %v1257_v61 = vadd.f32 %v1256_v17, %v2332_v45 }
 0x6b9   : > { %v1258_v3 = vpop.f32.mrf.mxu0 }
 0x6ba   : > { %1274 = vst [vmem:[%s2515_s26] sm:$0xff] %v1257_v61  ;;  %v1259_v13 = vadd.f32 %v1258_v3, %v509_v21 }
 0x6bc   : > { %v1261_v25 = vsel %vm638_vm0, %v1259_v13, -1e+30 }
 0x6bd   : > { %1262 = vmax.xlane.f32.xlu1 %v1261_v25 }
 0x6c1   : > { %733 = vadd.xlane.f32.xlu1 %v1589_v29 }
 0x6c5   : > { %911 = vadd.xlane.f32.xlu1 %v1591_v37 }
 0x6c9   : > { %1089 = vadd.xlane.f32.xlu1 %v1593_v33 }
 0x71f   : > { %v1179_v45 = vpop.xlane.xlu0 %1178 }
 0x720   : > { %1594 = vlog2.f32 %v1179_v45 }
 0x72d   : > { %v1595_v47 = vpop.eup %1594 }
 0x72e   : > { %v1181_v2 = vmul.f32 0.6931472, %v1595_v47 }
 0x730   : > { %v1182_v7 = vsub.f32 %v1175_v50, %v1181_v2 }
 0x732   : > { %1481 = vst [vmem:[%s2503_s20 + $0x30] sm:$0xff] %v1182_v7 }
 0x746   : > { %v1263_v11 = vpop.xlane.xlu1 %1262 }
 0x747   : > { %v1264_v43 = vsub.f32 %v1261_v25, %v1263_v11 }
 0x749   : > { %v1265_v49 = vmul.f32 1.442695, %v1264_v43 }
 0x74a   : > { %v734_v0 = vpop.xlane.xlu1 %733 }
 0x74b   : > { %1596 = vpow2.f32 %v1265_v49 }
 0x74c   : > { %1598 = vlog2.f32 %v734_v0 }
 0x74e   : > { %v912_v39 = vpop.xlane.xlu1 %911 }
 0x74f   : > { %1600 = vlog2.f32 %v912_v39 }
 0x752   : > { %v1090_v4 = vpop.xlane.xlu1 %1089 }
 0x753   : > { %1602 = vlog2.f32 %v1090_v4 }
 0x758   : > { %v1597_v6 = vpop.eup %1596 }
 0x759   : > { %v1599_v8 = vpop.eup %1598  ;;  %1267 = vadd.xlane.f32.xlu1 %v1597_v6 }
 0x75a   : > { %v736_v10 = vmul.f32 0.6931472, %v1599_v8 }
 0x75c   : > { %v1601_v12 = vpop.eup %1600  ;;  %v737_v14 = vsub.f32 %v730_v51, %v736_v10 }
 0x75d   : > { %v914_v16 = vmul.f32 0.6931472, %v1601_v12 }
 0x75e   : > { %1476 = vst [vmem:[%s2503_s20 + $0x8] sm:$0xff] %v737_v14 }
 0x75f   : > { %v915_v18 = vsub.f32 %v908_v5, %v914_v16 }
 0x760   : > { %v1603_v20 = vpop.eup %1602 }
 0x761   : > { %1478 = vst [vmem:[%s2503_s20 + $0x18] sm:$0xff] %v915_v18  ;;  %v1092_v22 = vmul.f32 0.6931472, %v1603_v20 }
 0x763   : > { %v1093_v24 = vsub.f32 %v1086_v55, %v1092_v22 }
 0x765   : > { %1480 = vst [vmem:[%s2503_s20 + $0x28] sm:$0xff] %v1093_v24 }
 0x766   : > { %1727 = shalt.err (!%p1724_p7)
}
 0x767   : > { %s1728_s12 = scalar_lea.hbm %s1307_s17, 128  ;;  %s1732_s11 = scalar_lea.hbm %s2602_s6, 256 }
 0x768   : > { %p1729_p6 = scmp.ne.s32.totalorder %s1307_s17, %s1728_s12  ;;  %p1733_p13 = scmp.lt.s32.totalorder %s1307_s17, %s2602_s6 }
 0x769   : > { %p1734_p8 = scmp.lt.s32.totalorder %s1732_s11, %s1728_s12 }
 0x76a   : > { %p1730_p3 = pnand %p1729_p6, %p2629_p12 }
 0x76b   : > { %p1735_p2 = por %p1734_p8, %p1733_p13 }
 0x76c   : > { %p1731_p4 = pneg %p1730_p3 }
 0x76e   : > { %p1736_p11 = pnand %p1735_p2, %p1731_p4 }
 0x770   : > { %1739 = shalt.err (!%p1736_p11)
}
 0x771   : > { %1502 = dma.vmem_to_hbm [thread:$0]  (%p2629_p12), %s1310_s0, 128, %s1307_s17, %s1281_s13  }
 0x772   : > { %s1293_s26 = sshll.u32 %s2503_s20, 4  ;;  %s2552_s19 = scalar_lea.hbm %s2601_s5, %s1485_s7  ;;  %s2545_s26 = int_to_ptr.vmem [resolvable:$true] %s1293_s26 }
 0x773   : > { %s1276_s14 = scalar_lea.sflag [#allocation5], %s2043_s30  ;;  %s1740_s17 = scalar_lea.vmem %s2545_s26, 1024 }
 0x774   : > { %p1741_p9 = scmp.ne.s32.totalorder %s2545_s26, %s1740_s17  ;;  %s1828_s0 = smov [#allocation11]  }
 0x775   : > { %s1744_s13 = sshll.u32 %s1828_s0, 4  ;;  %s1745_s13 = int_to_ptr.vmem [resolvable:$false] %s1744_s13 }
 0x776   : > { %p1742_p10 = pnand %p1741_p9, %p2629_p12  ;;  %s1746_s29 = scalar_lea.vmem %s1745_s13, 2048 }
 0x777   : > { %p1747_p5 = scmp.lt.s32.totalorder %s2545_s26, %s1745_s13  ;;  %p1748_p0 = scmp.lt.s32.totalorder %s1746_s29, %s1740_s17 }
 0x778   : > { %p1743_p1 = pneg %p1742_p10 }
 0x779   : > { %p1749_p7 = por %p1748_p0, %p1747_p5 }
 0x77b   : > { %p1750_p6 = pnand %p1749_p7, %p1743_p1 }
 0x7e2   : > { %v1268_v26 = vpop.xlane.xlu1 %1267 }
 0x7e3   : > { %1604 = vlog2.f32 %v1268_v26 }
 0x7f0   : > { %v1605_v28 = vpop.eup %1604 }
 0x7f1   : > { %v1270_v30 = vmul.f32 0.6931472, %v1605_v28 }
 0x7f3   : > { %v1271_v32 = vsub.f32 %v1264_v43, %v1270_v30 }
 0x7f5   : > { %1482 = vst [vmem:[%s2503_s20 + $0x38] sm:$0xff] %v1271_v32 }
 0x7f6   : > { %1753 = shalt.err (!%p1750_p6)
}
 0x7f7   : > { %s1754_s25 = scalar_lea.hbm %s2552_s19, 1024  ;;  %s1758_s15 = scalar_lea.hbm %s2601_s5, 2048 }
 0x7f8   : > { %p1755_p3 = scmp.ne.s32.totalorder %s2552_s19, %s1754_s25  ;;  %p1759_p8 = scmp.lt.s32.totalorder %s2552_s19, %s2601_s5 }
 0x7f9   : > { %p1760_p2 = scmp.lt.s32.totalorder %s1758_s15, %s1754_s25 }
 0x7fa   : > { %p1756_p4 = pnand %p1755_p3, %p2629_p12 }
 0x7fb   : > { %p1761_p11 = por %p1760_p2, %p1759_p8 }
 0x7fc   : > { %p1757_p13 = pneg %p1756_p4 }
 0x7fe   : > { %p1762_p9 = pnand %p1761_p11, %p1757_p13 }
 0x800   : > { %1765 = shalt.err (!%p1762_p9)
}
 0x801   : > { %s1829_s2 = smov 128   ;;  %s1830_s11 = smov 256  }
 0x802   : > { %s1831_s8 = smov 8  }
 0x803   : > { %1501 = dma.vmem_to_hbm [thread:$0]  (%p2629_p12), %s2545_s26, 1024, %s2552_s19, %s1276_s14, %s1829_s2, %s1830_s11, %s1831_s8  }
 0x804 PF: > { %s1321_s28 = sand.u32 1, %s1804_s21   ;;  %p2630_p10 = scmp.ne.s32.totalorder %s2616_s10, 0 }
 0x805   : > { %p2631_p1 = scmp.ge.s32.totalorder %s1816_s24, 2  ;;  %s1322_s16 = scalar_lea.sflag [#allocation5], %s1321_s28 }
 0x807   : > { %p1520_p5 = pnand %p2631_p1, %p2630_p10 }
 0x809   : > { %p1521_p0 = pneg %p1520_p5 }
 0x80b   : > { %1795 = dma.done.wait (%p1521_p0), %s1322_s16, 1024  }
 0x80c   : > { %1797 = vsyncadd (%p1521_p0), %s1322_s16, 4294966272  ;;  %s1331_s18 = scalar_lea.sflag [#allocation13], %s1321_s28 }
 0x80d   : > { %1799 = dma.done.wait (%p1521_p0), %s1331_s18, 128  }
 0x80e   : > { %1801 = vsyncadd (%p1521_p0), %s1331_s18, 4294967168  ;;  %s2632_s9 = sld [smem:[#allocation19_spill]]  ;;  %p27_p12 = scmp.ge.s32.totalorder %s1892_s27, 4  }
 0x80f   : > { %s2633_s21 = smov %s1808_s22  ;;  %s2634_s22 = smov %s1812_s23 }
 0x810   : > { %s2636_s24 = smov %s1892_s27  ;;  %29 = sbr.rel (!%p27_p12) target bundleno = 14 (0xe), region = 138 }
 0x814   : > { %s2635_s23 = smov %s2632_s9 }
 0x815   :  { %1336 = vsyncpa [#allocation4], 1 }
 0x816   :  { %1338 = vsyncpa [#allocation4 + $0x1], 1 }
 0x817   :  { %1339 = vsyncpa [#allocation7], 1 }
 0x818   :  { %1340 = vsyncpa [#allocation10], 1 }
 0x819   :  { %1342 = vsyncpa [#allocation10 + $0x1], 1 }
 0x81a   :  { %1343 = vsyncpa [#allocation5], 1 }
 0x81b   :  { %1345 = vsyncpa [#allocation5 + $0x1], 1 }
 0x81c   :  { %1346 = vsyncpa [#allocation13], 1 }
 0x81d   :  { %1348 = vsyncpa [#allocation13 + $0x1], 1 }

</bundles_post_ra>
